<compile_context>
chip_gen: v6e
topology: v6e:2x2x1
jax: 0.10.0
libtpu: 0.0.40
codegen_flags: <defaults>
</compile_context>

<pallas_src>
import jax
import jax.numpy as jnp
from jax.experimental import pallas as pl
from jax.experimental.pallas import tpu as pltpu


# ----------------------------------------------------------------------------
# Pallas kernel: per-batch Conv1d (single folded-tap matmul) + optional
# AvgPool1d(3, stride=1, pad=1, count_include_pad=True) + LeakyReLU.
# ----------------------------------------------------------------------------
def make_conv_kernel(K, S, Lo, Cout, pool, act, alpha):
    def kernel(xph_ref, w_ref, b_ref, o_ref):
        # xph_ref: (S, Lq, Cin) bf16  polyphase zero-padded input (this batch)
        # w_ref  : (K*Cin, Cout) bf16 conv weights, taps folded into contraction
        # b_ref  : (1, Cout)  f32
        # o_ref  : (Lo, Cout) f32
        # Gather taps from the VMEM-resident phases (no HBM im2col):
        # tap t reads phase t % S at row offset t // S.
        phases = [xph_ref[p] for p in range(S)]
        cols = [phases[t % S][t // S: t // S + Lo, :] for t in range(K)]
        patch = jnp.concatenate(cols, axis=-1)            # (Lo, K*Cin) bf16
        # one deep matmul instead of K shallow ones
        acc = jnp.dot(patch, w_ref[...], preferred_element_type=jnp.float32)
        acc = acc + b_ref[...]
        if pool:
            # AvgPool1d(3, stride=1, pad=1), count_include_pad=True:
            # banded (|i-j| <= 1)/3 matrix applied on the MXU (no VMEM copies).
            r = jax.lax.broadcasted_iota(jnp.int32, (Lo, Lo), 0)
            c = jax.lax.broadcasted_iota(jnp.int32, (Lo, Lo), 1)
            band = jnp.where(jnp.abs(r - c) <= 1,
                             jnp.float32(1.0 / 3.0), jnp.float32(0.0))
            acc = jnp.dot(band, acc, preferred_element_type=jnp.float32)
        if act:
            acc = jnp.where(acc > 0, acc, alpha * acc)    # LeakyReLU (f32 VPU)
        o_ref[...] = acc.astype(o_ref.dtype)

    return kernel


def conv_block(x, w, b, *, stride=1, pool=False, act=True, alpha=0.2):
    """Conv1d(+pool)(+leaky_relu) on channels-last x: [B, L, Cin] (f32)."""
    B, L, Cin = x.shape
    K, _, Cout = w.shape
    pad = K // 2
    Lp = L + 2 * pad
    Lo = (Lp - K) // stride + 1
    Lq = -(-Lp // stride)                      # ceil(Lp / stride)
    # conv zero padding (+ pad up to a multiple of stride for the phase split)
    xp = jnp.pad(x, ((0, 0), (pad, pad + (Lq * stride - Lp)), (0, 0)))
    # polyphase deinterleave (no data duplication): xph[b, p, q] = xp[b, q*stride + p]
    xph = xp.reshape(B, Lq, stride, Cin).transpose(0, 2, 1, 3)
    xph = xph.astype(jnp.bfloat16)             # bf16 operands, f32 accumulation
    wf = w.reshape(K * Cin, Cout).astype(jnp.bfloat16)   # tap-major fold
    b2 = b.reshape(1, Cout).astype(jnp.float32)

    kernel = make_conv_kernel(K, stride, Lo, Cout, pool, act, alpha)
    out = pl.pallas_call(
        kernel,
        out_shape=jax.ShapeDtypeStruct((B, Lo, Cout), jnp.float32),
        grid=(B,),
        in_specs=[
            pl.BlockSpec((None, stride, Lq, Cin), lambda i: (i, 0, 0, 0)),
            pl.BlockSpec((K * Cin, Cout), lambda i: (0, 0)),   # weights resident
            pl.BlockSpec((1, Cout), lambda i: (0, 0)),
        ],
        out_specs=pl.BlockSpec((None, Lo, Cout), lambda i: (i, 0, 0)),
        compiler_params=pltpu.CompilerParams(
            dimension_semantics=("parallel",)
        ),
    )(xph, wf, b2)
    return out


# ----------------------------------------------------------------------------
# nn.Upsample(scale_factor=k, mode='linear', align_corners=False)
# ----------------------------------------------------------------------------
def upsample_linear(x, scale):
    if scale == 1:
        # (i + 0.5)/1 - 0.5 == i  -> identity
        return x
    # TODO(synk): fuse this 2x interpolation into the decoder conv kernel so the
    # upsampled activation never hits HBM; kept as cheap JAX glue here.
    B, L, C = x.shape
    xprev = jnp.concatenate([x[:, :1], x[:, :-1]], axis=1)  # clamp left edge
    xnext = jnp.concatenate([x[:, 1:], x[:, -1:]], axis=1)  # clamp right edge
    even = 0.25 * xprev + 0.75 * x     # output index 2j
    odd = 0.75 * x + 0.25 * xnext      # output index 2j+1
    return jnp.stack([even, odd], axis=2).reshape(B, 2 * L, C)


# ----------------------------------------------------------------------------
# Parameters (deterministic, synthetic) and full forward
# ----------------------------------------------------------------------------
def init_params(key, d_model, kernel):
    enc_cfg = [
        (d_model, d_model, 1),
        (d_model, d_model, 2),
        (d_model, d_model // 2, 1),
        (d_model // 2, d_model // 2, 2),
        (d_model // 2, d_model // 4, 1),
    ]
    dec_cfg = [
        (d_model // 4, d_model // 2, 1),
        (d_model // 2, d_model // 2, 2),
        (d_model // 2, d_model, 1),
        (d_model, d_model, 2),
        (d_model, d_model, 1),
    ]

    def conv_init(k, cin, cout):
        kw, kb = jax.random.split(k)
        fan_in = cin * kernel
        # weight stored tap-major [K, Cin, Cout]  (PyTorch is [Cout, Cin, K])
        w = jax.random.normal(kw, (kernel, cin, cout), jnp.float32) / jnp.sqrt(
            float(fan_in)
        )
        b = 0.01 * jax.random.normal(kb, (cout,), jnp.float32)
        return w, b

    keys = jax.random.split(key, len(enc_cfg) + len(dec_cfg) + 1)
    params = {"enc": [], "dec": [], "end": None}
    ki = 0
    for cin, cout, stride in enc_cfg:
        w, b = conv_init(keys[ki], cin, cout)
        params["enc"].append((w, b, stride))
        ki += 1
    for cin, cout, scale in dec_cfg:
        w, b = conv_init(keys[ki], cin, cout)
        params["dec"].append((w, b, scale))
        ki += 1
    w, b = conv_init(keys[ki], d_model, d_model)
    params["end"] = (w, b)
    return params


def codecs_forward(x, params, alpha=0.2):
    """x: [B, seq_len, d_model] -> (feature [B, L/4, d/4], recover [B, L, d])"""
    h = x
    # ----- encoder: 5x (Conv1d + LeakyReLU [+ identity dropout]) -----
    for (w, b, stride) in params["enc"]:
        h = conv_block(h, w, b, stride=stride, pool=False, act=True, alpha=alpha)
    feature = h
    # ----- decoder: 5x (Upsample + Conv1d + AvgPool + LeakyReLU) -----
    for (w, b, scale) in params["dec"]:
        h = upsample_linear(h, scale)
        h = conv_block(h, w, b, stride=1, pool=True, act=True, alpha=alpha)
    # ----- ConvEndLayer: Conv1d only -----
    w, b = params["end"]
    recover = conv_block(h, w, b, stride=1, pool=False, act=False)
    # we never left channels-last, so these already equal the PyTorch outputs
    # feature[0].transpose(-1,-2) and recover.transpose(-1,-2).
    return feature, recover


if __name__ == "__main__":
    B, L, D, K = 2, 16, 16, 5  # small shapes; D divisible by 4, L by 4

    key = jax.random.PRNGKey(0)
    kx, kp = jax.random.split(key)
    x = jax.random.normal(kx, (B, L, D), jnp.float32)
    params = init_params(kp, d_model=D, kernel=K)

    fwd = jax.jit(lambda xx: codecs_forward(xx, params))
    feature, recover = fwd(x)
    jax.block_until_ready((feature, recover))

    assert feature.shape == (B, L // 4, D // 4), feature.shape
    assert recover.shape == (B, L, D), recover.shape
    assert feature.dtype == jnp.float32 and recover.dtype == jnp.float32
    assert bool(jnp.all(jnp.isfinite(feature))) and bool(jnp.all(jnp.isfinite(recover)))

    print("KERNEL_OK")
</pallas_src>

<mosaic_0001>
module attributes {stable_mosaic.version = 11 : i64} {
  func.func @kernel(%arg0: i32, %arg1: memref<1x1x20x16xbf16, #tpu.memory_space<vmem>>, %arg2: memref<80x16xbf16, #tpu.memory_space<vmem>>, %arg3: memref<1x16xf32, #tpu.memory_space<vmem>>, %arg4: memref<1x16x16xf32, #tpu.memory_space<vmem>>) attributes {dimension_semantics = [#tpu.dimension_semantics<parallel>], iteration_bounds = array<i64: 2>, scalar_prefetch = 0 : i64, scratch_operands = 0 : i64, tpu.core_type = #tpu.core_type<tc>, window_params = [{transform_indices = @transform_0, window_bounds = array<i64: 1, 1, 20, 16>}, {pipeline_mode = #tpu.pipeline_mode<synchronous>, transform_indices = @transform_1, window_bounds = array<i64: 80, 16>}, {pipeline_mode = #tpu.pipeline_mode<synchronous>, transform_indices = @transform_2, window_bounds = array<i64: 1, 16>}, {transform_indices = @transform_3, window_bounds = array<i64: 1, 16, 16>}]} {
    %c0 = arith.constant 0 : index
    %c0_0 = arith.constant 0 : index
    %c0_1 = arith.constant 0 : index
    %c0_2 = arith.constant 0 : index
    %0 = vector.load %arg1[%c0, %c0_0, %c0_1, %c0_2] : memref<1x1x20x16xbf16, #tpu.memory_space<vmem>>, vector<1x1x20x16xbf16>
    %1 = vector.shape_cast %0 : vector<1x1x20x16xbf16> to vector<20x16xbf16>
    %2 = vector.extract_strided_slice %1 {offsets = [0, 0], sizes = [16, 16], strides = [1, 1]} : vector<20x16xbf16> to vector<16x16xbf16>
    %3 = vector.extract_strided_slice %1 {offsets = [1, 0], sizes = [16, 16], strides = [1, 1]} : vector<20x16xbf16> to vector<16x16xbf16>
    %4 = vector.extract_strided_slice %1 {offsets = [2, 0], sizes = [16, 16], strides = [1, 1]} : vector<20x16xbf16> to vector<16x16xbf16>
    %5 = vector.extract_strided_slice %1 {offsets = [3, 0], sizes = [16, 16], strides = [1, 1]} : vector<20x16xbf16> to vector<16x16xbf16>
    %6 = vector.extract_strided_slice %1 {offsets = [4, 0], sizes = [16, 16], strides = [1, 1]} : vector<20x16xbf16> to vector<16x16xbf16>
    %7 = tpu.concatenate %2, %3, %4, %5, %6 in 1 : vector<16x16xbf16>, vector<16x16xbf16>, vector<16x16xbf16>, vector<16x16xbf16>, vector<16x16xbf16> -> vector<16x80xbf16>
    %c0_3 = arith.constant 0 : index
    %c0_4 = arith.constant 0 : index
    %8 = vector.load %arg2[%c0_3, %c0_4] : memref<80x16xbf16, #tpu.memory_space<vmem>>, vector<80x16xbf16>
    %cst = arith.constant dense<0.000000e+00> : vector<16x16xf32>
    %9 = tpu.matmul %7, %8, %cst {dimension_numbers = #tpu.dot_dimension_numbers<[1], [0], [0], [1], [0, 0, 1, 1], [], []>} : vector<16x80xbf16>, vector<80x16xbf16>, vector<16x16xf32> -> vector<16x16xf32>
    %c0_5 = arith.constant 0 : index
    %c0_6 = arith.constant 0 : index
    %10 = vector.load %arg3[%c0_5, %c0_6] : memref<1x16xf32, #tpu.memory_space<vmem>>, vector<1x16xf32>
    %11 = vector.broadcast %10 : vector<1x16xf32> to vector<16x16xf32>
    %12 = arith.addf %9, %11 : vector<16x16xf32>
    %cst_7 = arith.constant 0.000000e+00 : f32
    %13 = vector.broadcast %cst_7 : f32 to vector<16x16xf32>
    %14 = arith.cmpf ogt, %12, %13 : vector<16x16xf32>
    %cst_8 = arith.constant 2.000000e-01 : f32
    %15 = vector.broadcast %cst_8 : f32 to vector<16x16xf32>
    %16 = arith.mulf %15, %12 : vector<16x16xf32>
    %17 = arith.select %14, %12, %16 : vector<16x16xi1>, vector<16x16xf32>
    %c0_9 = arith.constant 0 : index
    %c0_10 = arith.constant 0 : index
    %c0_11 = arith.constant 0 : index
    %18 = vector.load %arg4[%c0_9, %c0_10, %c0_11] : memref<1x16x16xf32, #tpu.memory_space<vmem>>, vector<1x16x16xf32>
    %19 = vector.shape_cast %18 : vector<1x16x16xf32> to vector<16x16xf32>
    %20 = vector.shape_cast %17 : vector<16x16xf32> to vector<1x16x16xf32>
    tpu.vector_store %arg4[%c0_9, %c0_10, %c0_11], %20 {strides = array<i32>} : memref<1x16x16xf32, #tpu.memory_space<vmem>>, vector<1x16x16xf32>,
    return
  }
  func.func @transform_0(%arg0: i32) -> (i32, i32, i32, i32) {
    %c0_i32 = arith.constant 0 : i32
    %c0_i32_0 = arith.constant 0 : i32
    %c0_i32_1 = arith.constant 0 : i32
    %c0_i32_2 = arith.constant 0 : i32
    return %arg0, %c0_i32, %c0_i32_0, %c0_i32_1 : i32, i32, i32, i32
  }
  func.func @transform_1(%arg0: i32) -> (i32, i32) {
    %c0_i32 = arith.constant 0 : i32
    %c0_i32_0 = arith.constant 0 : i32
    %c0_i32_1 = arith.constant 0 : i32
    return %c0_i32, %c0_i32_0 : i32, i32
  }
  func.func @transform_2(%arg0: i32) -> (i32, i32) {
    %c0_i32 = arith.constant 0 : i32
    %c0_i32_0 = arith.constant 0 : i32
    %c0_i32_1 = arith.constant 0 : i32
    return %c0_i32, %c0_i32_0 : i32, i32
  }
  func.func @transform_3(%arg0: i32) -> (i32, i32, i32) {
    %c0_i32 = arith.constant 0 : i32
    %c0_i32_0 = arith.constant 0 : i32
    %c0_i32_1 = arith.constant 0 : i32
    return %arg0, %c0_i32, %c0_i32_0 : i32, i32, i32
  }
}

module attributes {stable_mosaic.version = 11 : i64} {
  func.func @kernel(%arg0: i32, %arg1: memref<1x2x10x16xbf16, #tpu.memory_space<vmem>>, %arg2: memref<80x16xbf16, #tpu.memory_space<vmem>>, %arg3: memref<1x16xf32, #tpu.memory_space<vmem>>, %arg4: memref<1x8x16xf32, #tpu.memory_space<vmem>>) attributes {dimension_semantics = [#tpu.dimension_semantics<parallel>], iteration_bounds = array<i64: 2>, scalar_prefetch = 0 : i64, scratch_operands = 0 : i64, tpu.core_type = #tpu.core_type<tc>, window_params = [{transform_indices = @transform_0, window_bounds = array<i64: 1, 2, 10, 16>}, {pipeline_mode = #tpu.pipeline_mode<synchronous>, transform_indices = @transform_1, window_bounds = array<i64: 80, 16>}, {pipeline_mode = #tpu.pipeline_mode<synchronous>, transform_indices = @transform_2, window_bounds = array<i64: 1, 16>}, {transform_indices = @transform_3, window_bounds = array<i64: 1, 8, 16>}]} {
    %c0 = arith.constant 0 : index
    %c0_0 = arith.constant 0 : index
    %c0_1 = arith.constant 0 : index
    %c0_2 = arith.constant 0 : index
    %0 = vector.load %arg1[%c0, %c0_0, %c0_1, %c0_2] : memref<1x2x10x16xbf16, #tpu.memory_space<vmem>>, vector<1x1x10x16xbf16>
    %1 = vector.shape_cast %0 : vector<1x1x10x16xbf16> to vector<10x16xbf16>
    %c0_3 = arith.constant 0 : index
    %c1 = arith.constant 1 : index
    %c0_4 = arith.constant 0 : index
    %c0_5 = arith.constant 0 : index
    %2 = vector.load %arg1[%c0_3, %c1, %c0_4, %c0_5] : memref<1x2x10x16xbf16, #tpu.memory_space<vmem>>, vector<1x1x10x16xbf16>
    %3 = vector.shape_cast %2 : vector<1x1x10x16xbf16> to vector<10x16xbf16>
    %4 = vector.extract_strided_slice %1 {offsets = [0, 0], sizes = [8, 16], strides = [1, 1]} : vector<10x16xbf16> to vector<8x16xbf16>
    %5 = vector.extract_strided_slice %3 {offsets = [0, 0], sizes = [8, 16], strides = [1, 1]} : vector<10x16xbf16> to vector<8x16xbf16>
    %6 = vector.extract_strided_slice %1 {offsets = [1, 0], sizes = [8, 16], strides = [1, 1]} : vector<10x16xbf16> to vector<8x16xbf16>
    %7 = vector.extract_strided_slice %3 {offsets = [1, 0], sizes = [8, 16], strides = [1, 1]} : vector<10x16xbf16> to vector<8x16xbf16>
    %8 = vector.extract_strided_slice %1 {offsets = [2, 0], sizes = [8, 16], strides = [1, 1]} : vector<10x16xbf16> to vector<8x16xbf16>
    %9 = tpu.concatenate %4, %5, %6, %7, %8 in 1 : vector<8x16xbf16>, vector<8x16xbf16>, vector<8x16xbf16>, vector<8x16xbf16>, vector<8x16xbf16> -> vector<8x80xbf16>
    %c0_6 = arith.constant 0 : index
    %c0_7 = arith.constant 0 : index
    %10 = vector.load %arg2[%c0_6, %c0_7] : memref<80x16xbf16, #tpu.memory_space<vmem>>, vector<80x16xbf16>
    %cst = arith.constant dense<0.000000e+00> : vector<8x16xf32>
    %11 = tpu.matmul %9, %10, %cst {dimension_numbers = #tpu.dot_dimension_numbers<[1], [0], [0], [1], [0, 0, 1, 1], [], []>} : vector<8x80xbf16>, vector<80x16xbf16>, vector<8x16xf32> -> vector<8x16xf32>
    %c0_8 = arith.constant 0 : index
    %c0_9 = arith.constant 0 : index
    %12 = vector.load %arg3[%c0_8, %c0_9] : memref<1x16xf32, #tpu.memory_space<vmem>>, vector<1x16xf32>
    %13 = vector.broadcast %12 : vector<1x16xf32> to vector<8x16xf32>
    %14 = arith.addf %11, %13 : vector<8x16xf32>
    %cst_10 = arith.constant 0.000000e+00 : f32
    %15 = vector.broadcast %cst_10 : f32 to vector<8x16xf32>
    %16 = arith.cmpf ogt, %14, %15 : vector<8x16xf32>
    %cst_11 = arith.constant 2.000000e-01 : f32
    %17 = vector.broadcast %cst_11 : f32 to vector<8x16xf32>
    %18 = arith.mulf %17, %14 : vector<8x16xf32>
    %19 = arith.select %16, %14, %18 : vector<8x16xi1>, vector<8x16xf32>
    %c0_12 = arith.constant 0 : index
    %c0_13 = arith.constant 0 : index
    %c0_14 = arith.constant 0 : index
    %20 = vector.load %arg4[%c0_12, %c0_13, %c0_14] : memref<1x8x16xf32, #tpu.memory_space<vmem>>, vector<1x8x16xf32>
    %21 = vector.shape_cast %20 : vector<1x8x16xf32> to vector<8x16xf32>
    %22 = vector.shape_cast %19 : vector<8x16xf32> to vector<1x8x16xf32>
    tpu.vector_store %arg4[%c0_12, %c0_13, %c0_14], %22 {strides = array<i32>} : memref<1x8x16xf32, #tpu.memory_space<vmem>>, vector<1x8x16xf32>,
    return
  }
  func.func @transform_0(%arg0: i32) -> (i32, i32, i32, i32) {
    %c0_i32 = arith.constant 0 : i32
    %c0_i32_0 = arith.constant 0 : i32
    %c0_i32_1 = arith.constant 0 : i32
    %c0_i32_2 = arith.constant 0 : i32
    return %arg0, %c0_i32, %c0_i32_0, %c0_i32_1 : i32, i32, i32, i32
  }
  func.func @transform_1(%arg0: i32) -> (i32, i32) {
    %c0_i32 = arith.constant 0 : i32
    %c0_i32_0 = arith.constant 0 : i32
    %c0_i32_1 = arith.constant 0 : i32
    return %c0_i32, %c0_i32_0 : i32, i32
  }
  func.func @transform_2(%arg0: i32) -> (i32, i32) {
    %c0_i32 = arith.constant 0 : i32
    %c0_i32_0 = arith.constant 0 : i32
    %c0_i32_1 = arith.constant 0 : i32
    return %c0_i32, %c0_i32_0 : i32, i32
  }
  func.func @transform_3(%arg0: i32) -> (i32, i32, i32) {
    %c0_i32 = arith.constant 0 : i32
    %c0_i32_0 = arith.constant 0 : i32
    %c0_i32_1 = arith.constant 0 : i32
    return %arg0, %c0_i32, %c0_i32_0 : i32, i32, i32
  }
}

module attributes {stable_mosaic.version = 11 : i64} {
  func.func @kernel(%arg0: i32, %arg1: memref<1x1x12x16xbf16, #tpu.memory_space<vmem>>, %arg2: memref<80x8xbf16, #tpu.memory_space<vmem>>, %arg3: memref<1x8xf32, #tpu.memory_space<vmem>>, %arg4: memref<1x8x8xf32, #tpu.memory_space<vmem>>) attributes {dimension_semantics = [#tpu.dimension_semantics<parallel>], iteration_bounds = array<i64: 2>, scalar_prefetch = 0 : i64, scratch_operands = 0 : i64, tpu.core_type = #tpu.core_type<tc>, window_params = [{transform_indices = @transform_0, window_bounds = array<i64: 1, 1, 12, 16>}, {pipeline_mode = #tpu.pipeline_mode<synchronous>, transform_indices = @transform_1, window_bounds = array<i64: 80, 8>}, {pipeline_mode = #tpu.pipeline_mode<synchronous>, transform_indices = @transform_2, window_bounds = array<i64: 1, 8>}, {transform_indices = @transform_3, window_bounds = array<i64: 1, 8, 8>}]} {
    %c0 = arith.constant 0 : index
    %c0_0 = arith.constant 0 : index
    %c0_1 = arith.constant 0 : index
    %c0_2 = arith.constant 0 : index
    %0 = vector.load %arg1[%c0, %c0_0, %c0_1, %c0_2] : memref<1x1x12x16xbf16, #tpu.memory_space<vmem>>, vector<1x1x12x16xbf16>
    %1 = vector.shape_cast %0 : vector<1x1x12x16xbf16> to vector<12x16xbf16>
    %2 = vector.extract_strided_slice %1 {offsets = [0, 0], sizes = [8, 16], strides = [1, 1]} : vector<12x16xbf16> to vector<8x16xbf16>
    %3 = vector.extract_strided_slice %1 {offsets = [1, 0], sizes = [8, 16], strides = [1, 1]} : vector<12x16xbf16> to vector<8x16xbf16>
    %4 = vector.extract_strided_slice %1 {offsets = [2, 0], sizes = [8, 16], strides = [1, 1]} : vector<12x16xbf16> to vector<8x16xbf16>
    %5 = vector.extract_strided_slice %1 {offsets = [3, 0], sizes = [8, 16], strides = [1, 1]} : vector<12x16xbf16> to vector<8x16xbf16>
    %6 = vector.extract_strided_slice %1 {offsets = [4, 0], sizes = [8, 16], strides = [1, 1]} : vector<12x16xbf16> to vector<8x16xbf16>
    %7 = tpu.concatenate %2, %3, %4, %5, %6 in 1 : vector<8x16xbf16>, vector<8x16xbf16>, vector<8x16xbf16>, vector<8x16xbf16>, vector<8x16xbf16> -> vector<8x80xbf16>
    %c0_3 = arith.constant 0 : index
    %c0_4 = arith.constant 0 : index
    %8 = vector.load %arg2[%c0_3, %c0_4] : memref<80x8xbf16, #tpu.memory_space<vmem>>, vector<80x8xbf16>
    %cst = arith.constant dense<0.000000e+00> : vector<8x8xf32>
    %9 = tpu.matmul %7, %8, %cst {dimension_numbers = #tpu.dot_dimension_numbers<[1], [0], [0], [1], [0, 0, 1, 1], [], []>} : vector<8x80xbf16>, vector<80x8xbf16>, vector<8x8xf32> -> vector<8x8xf32>
    %c0_5 = arith.constant 0 : index
    %c0_6 = arith.constant 0 : index
    %10 = vector.load %arg3[%c0_5, %c0_6] : memref<1x8xf32, #tpu.memory_space<vmem>>, vector<1x8xf32>
    %11 = vector.broadcast %10 : vector<1x8xf32> to vector<8x8xf32>
    %12 = arith.addf %9, %11 : vector<8x8xf32>
    %cst_7 = arith.constant 0.000000e+00 : f32
    %13 = vector.broadcast %cst_7 : f32 to vector<8x8xf32>
    %14 = arith.cmpf ogt, %12, %13 : vector<8x8xf32>
    %cst_8 = arith.constant 2.000000e-01 : f32
    %15 = vector.broadcast %cst_8 : f32 to vector<8x8xf32>
    %16 = arith.mulf %15, %12 : vector<8x8xf32>
    %17 = arith.select %14, %12, %16 : vector<8x8xi1>, vector<8x8xf32>
    %c0_9 = arith.constant 0 : index
    %c0_10 = arith.constant 0 : index
    %c0_11 = arith.constant 0 : index
    %18 = vector.load %arg4[%c0_9, %c0_10, %c0_11] : memref<1x8x8xf32, #tpu.memory_space<vmem>>, vector<1x8x8xf32>
    %19 = vector.shape_cast %18 : vector<1x8x8xf32> to vector<8x8xf32>
    %20 = vector.shape_cast %17 : vector<8x8xf32> to vector<1x8x8xf32>
    tpu.vector_store %arg4[%c0_9, %c0_10, %c0_11], %20 {strides = array<i32>} : memref<1x8x8xf32, #tpu.memory_space<vmem>>, vector<1x8x8xf32>,
    return
  }
  func.func @transform_0(%arg0: i32) -> (i32, i32, i32, i32) {
    %c0_i32 = arith.constant 0 : i32
    %c0_i32_0 = arith.constant 0 : i32
    %c0_i32_1 = arith.constant 0 : i32
    %c0_i32_2 = arith.constant 0 : i32
    return %arg0, %c0_i32, %c0_i32_0, %c0_i32_1 : i32, i32, i32, i32
  }
  func.func @transform_1(%arg0: i32) -> (i32, i32) {
    %c0_i32 = arith.constant 0 : i32
    %c0_i32_0 = arith.constant 0 : i32
    %c0_i32_1 = arith.constant 0 : i32
    return %c0_i32, %c0_i32_0 : i32, i32
  }
  func.func @transform_2(%arg0: i32) -> (i32, i32) {
    %c0_i32 = arith.constant 0 : i32
    %c0_i32_0 = arith.constant 0 : i32
    %c0_i32_1 = arith.constant 0 : i32
    return %c0_i32, %c0_i32_0 : i32, i32
  }
  func.func @transform_3(%arg0: i32) -> (i32, i32, i32) {
    %c0_i32 = arith.constant 0 : i32
    %c0_i32_0 = arith.constant 0 : i32
    %c0_i32_1 = arith.constant 0 : i32
    return %arg0, %c0_i32, %c0_i32_0 : i32, i32, i32
  }
}

module attributes {stable_mosaic.version = 11 : i64} {
  func.func @kernel(%arg0: i32, %arg1: memref<1x2x6x8xbf16, #tpu.memory_space<vmem>>, %arg2: memref<40x8xbf16, #tpu.memory_space<vmem>>, %arg3: memref<1x8xf32, #tpu.memory_space<vmem>>, %arg4: memref<1x4x8xf32, #tpu.memory_space<vmem>>) attributes {dimension_semantics = [#tpu.dimension_semantics<parallel>], iteration_bounds = array<i64: 2>, scalar_prefetch = 0 : i64, scratch_operands = 0 : i64, tpu.core_type = #tpu.core_type<tc>, window_params = [{transform_indices = @transform_0, window_bounds = array<i64: 1, 2, 6, 8>}, {pipeline_mode = #tpu.pipeline_mode<synchronous>, transform_indices = @transform_1, window_bounds = array<i64: 40, 8>}, {pipeline_mode = #tpu.pipeline_mode<synchronous>, transform_indices = @transform_2, window_bounds = array<i64: 1, 8>}, {transform_indices = @transform_3, window_bounds = array<i64: 1, 4, 8>}]} {
    %c0 = arith.constant 0 : index
    %c0_0 = arith.constant 0 : index
    %c0_1 = arith.constant 0 : index
    %c0_2 = arith.constant 0 : index
    %0 = vector.load %arg1[%c0, %c0_0, %c0_1, %c0_2] : memref<1x2x6x8xbf16, #tpu.memory_space<vmem>>, vector<1x1x6x8xbf16>
    %1 = vector.shape_cast %0 : vector<1x1x6x8xbf16> to vector<6x8xbf16>
    %c0_3 = arith.constant 0 : index
    %c1 = arith.constant 1 : index
    %c0_4 = arith.constant 0 : index
    %c0_5 = arith.constant 0 : index
    %2 = vector.load %arg1[%c0_3, %c1, %c0_4, %c0_5] : memref<1x2x6x8xbf16, #tpu.memory_space<vmem>>, vector<1x1x6x8xbf16>
    %3 = vector.shape_cast %2 : vector<1x1x6x8xbf16> to vector<6x8xbf16>
    %4 = vector.extract_strided_slice %1 {offsets = [0, 0], sizes = [4, 8], strides = [1, 1]} : vector<6x8xbf16> to vector<4x8xbf16>
    %5 = vector.extract_strided_slice %3 {offsets = [0, 0], sizes = [4, 8], strides = [1, 1]} : vector<6x8xbf16> to vector<4x8xbf16>
    %6 = vector.extract_strided_slice %1 {offsets = [1, 0], sizes = [4, 8], strides = [1, 1]} : vector<6x8xbf16> to vector<4x8xbf16>
    %7 = vector.extract_strided_slice %3 {offsets = [1, 0], sizes = [4, 8], strides = [1, 1]} : vector<6x8xbf16> to vector<4x8xbf16>
    %8 = vector.extract_strided_slice %1 {offsets = [2, 0], sizes = [4, 8], strides = [1, 1]} : vector<6x8xbf16> to vector<4x8xbf16>
    %9 = tpu.concatenate %4, %5, %6, %7, %8 in 1 : vector<4x8xbf16>, vector<4x8xbf16>, vector<4x8xbf16>, vector<4x8xbf16>, vector<4x8xbf16> -> vector<4x40xbf16>
    %c0_6 = arith.constant 0 : index
    %c0_7 = arith.constant 0 : index
    %10 = vector.load %arg2[%c0_6, %c0_7] : memref<40x8xbf16, #tpu.memory_space<vmem>>, vector<40x8xbf16>
    %cst = arith.constant dense<0.000000e+00> : vector<4x8xf32>
    %11 = tpu.matmul %9, %10, %cst {dimension_numbers = #tpu.dot_dimension_numbers<[1], [0], [0], [1], [0, 0, 1, 1], [], []>} : vector<4x40xbf16>, vector<40x8xbf16>, vector<4x8xf32> -> vector<4x8xf32>
    %c0_8 = arith.constant 0 : index
    %c0_9 = arith.constant 0 : index
    %12 = vector.load %arg3[%c0_8, %c0_9] : memref<1x8xf32, #tpu.memory_space<vmem>>, vector<1x8xf32>
    %13 = vector.broadcast %12 : vector<1x8xf32> to vector<4x8xf32>
    %14 = arith.addf %11, %13 : vector<4x8xf32>
    %cst_10 = arith.constant 0.000000e+00 : f32
    %15 = vector.broadcast %cst_10 : f32 to vector<4x8xf32>
    %16 = arith.cmpf ogt, %14, %15 : vector<4x8xf32>
    %cst_11 = arith.constant 2.000000e-01 : f32
    %17 = vector.broadcast %cst_11 : f32 to vector<4x8xf32>
    %18 = arith.mulf %17, %14 : vector<4x8xf32>
    %19 = arith.select %16, %14, %18 : vector<4x8xi1>, vector<4x8xf32>
    %c0_12 = arith.constant 0 : index
    %c0_13 = arith.constant 0 : index
    %c0_14 = arith.constant 0 : index
    %20 = vector.load %arg4[%c0_12, %c0_13, %c0_14] : memref<1x4x8xf32, #tpu.memory_space<vmem>>, vector<1x4x8xf32>
    %21 = vector.shape_cast %20 : vector<1x4x8xf32> to vector<4x8xf32>
    %22 = vector.shape_cast %19 : vector<4x8xf32> to vector<1x4x8xf32>
    tpu.vector_store %arg4[%c0_12, %c0_13, %c0_14], %22 {strides = array<i32>} : memref<1x4x8xf32, #tpu.memory_space<vmem>>, vector<1x4x8xf32>,
    return
  }
  func.func @transform_0(%arg0: i32) -> (i32, i32, i32, i32) {
    %c0_i32 = arith.constant 0 : i32
    %c0_i32_0 = arith.constant 0 : i32
    %c0_i32_1 = arith.constant 0 : i32
    %c0_i32_2 = arith.constant 0 : i32
    return %arg0, %c0_i32, %c0_i32_0, %c0_i32_1 : i32, i32, i32, i32
  }
  func.func @transform_1(%arg0: i32) -> (i32, i32) {
    %c0_i32 = arith.constant 0 : i32
    %c0_i32_0 = arith.constant 0 : i32
    %c0_i32_1 = arith.constant 0 : i32
    return %c0_i32, %c0_i32_0 : i32, i32
  }
  func.func @transform_2(%arg0: i32) -> (i32, i32) {
    %c0_i32 = arith.constant 0 : i32
    %c0_i32_0 = arith.constant 0 : i32
    %c0_i32_1 = arith.constant 0 : i32
    return %c0_i32, %c0_i32_0 : i32, i32
  }
  func.func @transform_3(%arg0: i32) -> (i32, i32, i32) {
    %c0_i32 = arith.constant 0 : i32
    %c0_i32_0 = arith.constant 0 : i32
    %c0_i32_1 = arith.constant 0 : i32
    return %arg0, %c0_i32, %c0_i32_0 : i32, i32, i32
  }
}

module attributes {stable_mosaic.version = 11 : i64} {
  func.func @kernel(%arg0: i32, %arg1: memref<1x1x8x8xbf16, #tpu.memory_space<vmem>>, %arg2: memref<40x4xbf16, #tpu.memory_space<vmem>>, %arg3: memref<1x4xf32, #tpu.memory_space<vmem>>, %arg4: memref<1x4x4xf32, #tpu.memory_space<vmem>>) attributes {dimension_semantics = [#tpu.dimension_semantics<parallel>], iteration_bounds = array<i64: 2>, scalar_prefetch = 0 : i64, scratch_operands = 0 : i64, tpu.core_type = #tpu.core_type<tc>, window_params = [{transform_indices = @transform_0, window_bounds = array<i64: 1, 1, 8, 8>}, {pipeline_mode = #tpu.pipeline_mode<synchronous>, transform_indices = @transform_1, window_bounds = array<i64: 40, 4>}, {pipeline_mode = #tpu.pipeline_mode<synchronous>, transform_indices = @transform_2, window_bounds = array<i64: 1, 4>}, {transform_indices = @transform_3, window_bounds = array<i64: 1, 4, 4>}]} {
    %c0 = arith.constant 0 : index
    %c0_0 = arith.constant 0 : index
    %c0_1 = arith.constant 0 : index
    %c0_2 = arith.constant 0 : index
    %0 = vector.load %arg1[%c0, %c0_0, %c0_1, %c0_2] : memref<1x1x8x8xbf16, #tpu.memory_space<vmem>>, vector<1x1x8x8xbf16>
    %1 = vector.shape_cast %0 : vector<1x1x8x8xbf16> to vector<8x8xbf16>
    %2 = vector.extract_strided_slice %1 {offsets = [0, 0], sizes = [4, 8], strides = [1, 1]} : vector<8x8xbf16> to vector<4x8xbf16>
    %3 = vector.extract_strided_slice %1 {offsets = [1, 0], sizes = [4, 8], strides = [1, 1]} : vector<8x8xbf16> to vector<4x8xbf16>
    %4 = vector.extract_strided_slice %1 {offsets = [2, 0], sizes = [4, 8], strides = [1, 1]} : vector<8x8xbf16> to vector<4x8xbf16>
    %5 = vector.extract_strided_slice %1 {offsets = [3, 0], sizes = [4, 8], strides = [1, 1]} : vector<8x8xbf16> to vector<4x8xbf16>
    %6 = vector.extract_strided_slice %1 {offsets = [4, 0], sizes = [4, 8], strides = [1, 1]} : vector<8x8xbf16> to vector<4x8xbf16>
    %7 = tpu.concatenate %2, %3, %4, %5, %6 in 1 : vector<4x8xbf16>, vector<4x8xbf16>, vector<4x8xbf16>, vector<4x8xbf16>, vector<4x8xbf16> -> vector<4x40xbf16>
    %c0_3 = arith.constant 0 : index
    %c0_4 = arith.constant 0 : index
    %8 = vector.load %arg2[%c0_3, %c0_4] : memref<40x4xbf16, #tpu.memory_space<vmem>>, vector<40x4xbf16>
    %cst = arith.constant dense<0.000000e+00> : vector<4x4xf32>
    %9 = tpu.matmul %7, %8, %cst {dimension_numbers = #tpu.dot_dimension_numbers<[1], [0], [0], [1], [0, 0, 1, 1], [], []>} : vector<4x40xbf16>, vector<40x4xbf16>, vector<4x4xf32> -> vector<4x4xf32>
    %c0_5 = arith.constant 0 : index
    %c0_6 = arith.constant 0 : index
    %10 = vector.load %arg3[%c0_5, %c0_6] : memref<1x4xf32, #tpu.memory_space<vmem>>, vector<1x4xf32>
    %11 = vector.broadcast %10 : vector<1x4xf32> to vector<4x4xf32>
    %12 = arith.addf %9, %11 : vector<4x4xf32>
    %cst_7 = arith.constant 0.000000e+00 : f32
    %13 = vector.broadcast %cst_7 : f32 to vector<4x4xf32>
    %14 = arith.cmpf ogt, %12, %13 : vector<4x4xf32>
    %cst_8 = arith.constant 2.000000e-01 : f32
    %15 = vector.broadcast %cst_8 : f32 to vector<4x4xf32>
    %16 = arith.mulf %15, %12 : vector<4x4xf32>
    %17 = arith.select %14, %12, %16 : vector<4x4xi1>, vector<4x4xf32>
    %c0_9 = arith.constant 0 : index
    %c0_10 = arith.constant 0 : index
    %c0_11 = arith.constant 0 : index
    %18 = vector.load %arg4[%c0_9, %c0_10, %c0_11] : memref<1x4x4xf32, #tpu.memory_space<vmem>>, vector<1x4x4xf32>
    %19 = vector.shape_cast %18 : vector<1x4x4xf32> to vector<4x4xf32>
    %20 = vector.shape_cast %17 : vector<4x4xf32> to vector<1x4x4xf32>
    tpu.vector_store %arg4[%c0_9, %c0_10, %c0_11], %20 {strides = array<i32>} : memref<1x4x4xf32, #tpu.memory_space<vmem>>, vector<1x4x4xf32>,
    return
  }
  func.func @transform_0(%arg0: i32) -> (i32, i32, i32, i32) {
    %c0_i32 = arith.constant 0 : i32
    %c0_i32_0 = arith.constant 0 : i32
    %c0_i32_1 = arith.constant 0 : i32
    %c0_i32_2 = arith.constant 0 : i32
    return %arg0, %c0_i32, %c0_i32_0, %c0_i32_1 : i32, i32, i32, i32
  }
  func.func @transform_1(%arg0: i32) -> (i32, i32) {
    %c0_i32 = arith.constant 0 : i32
    %c0_i32_0 = arith.constant 0 : i32
    %c0_i32_1 = arith.constant 0 : i32
    return %c0_i32, %c0_i32_0 : i32, i32
  }
  func.func @transform_2(%arg0: i32) -> (i32, i32) {
    %c0_i32 = arith.constant 0 : i32
    %c0_i32_0 = arith.constant 0 : i32
    %c0_i32_1 = arith.constant 0 : i32
    return %c0_i32, %c0_i32_0 : i32, i32
  }
  func.func @transform_3(%arg0: i32) -> (i32, i32, i32) {
    %c0_i32 = arith.constant 0 : i32
    %c0_i32_0 = arith.constant 0 : i32
    %c0_i32_1 = arith.constant 0 : i32
    return %arg0, %c0_i32, %c0_i32_0 : i32, i32, i32
  }
}

module attributes {stable_mosaic.version = 11 : i64} {
  func.func @kernel(%arg0: i32, %arg1: memref<1x1x8x4xbf16, #tpu.memory_space<vmem>>, %arg2: memref<20x8xbf16, #tpu.memory_space<vmem>>, %arg3: memref<1x8xf32, #tpu.memory_space<vmem>>, %arg4: memref<1x4x8xf32, #tpu.memory_space<vmem>>) attributes {dimension_semantics = [#tpu.dimension_semantics<parallel>], iteration_bounds = array<i64: 2>, scalar_prefetch = 0 : i64, scratch_operands = 0 : i64, tpu.core_type = #tpu.core_type<tc>, window_params = [{transform_indices = @transform_0, window_bounds = array<i64: 1, 1, 8, 4>}, {pipeline_mode = #tpu.pipeline_mode<synchronous>, transform_indices = @transform_1, window_bounds = array<i64: 20, 8>}, {pipeline_mode = #tpu.pipeline_mode<synchronous>, transform_indices = @transform_2, window_bounds = array<i64: 1, 8>}, {transform_indices = @transform_3, window_bounds = array<i64: 1, 4, 8>}]} {
    %c0 = arith.constant 0 : index
    %c0_0 = arith.constant 0 : index
    %c0_1 = arith.constant 0 : index
    %c0_2 = arith.constant 0 : index
    %0 = vector.load %arg1[%c0, %c0_0, %c0_1, %c0_2] : memref<1x1x8x4xbf16, #tpu.memory_space<vmem>>, vector<1x1x8x4xbf16>
    %1 = vector.shape_cast %0 : vector<1x1x8x4xbf16> to vector<8x4xbf16>
    %2 = vector.extract_strided_slice %1 {offsets = [0, 0], sizes = [4, 4], strides = [1, 1]} : vector<8x4xbf16> to vector<4x4xbf16>
    %3 = vector.extract_strided_slice %1 {offsets = [1, 0], sizes = [4, 4], strides = [1, 1]} : vector<8x4xbf16> to vector<4x4xbf16>
    %4 = vector.extract_strided_slice %1 {offsets = [2, 0], sizes = [4, 4], strides = [1, 1]} : vector<8x4xbf16> to vector<4x4xbf16>
    %5 = vector.extract_strided_slice %1 {offsets = [3, 0], sizes = [4, 4], strides = [1, 1]} : vector<8x4xbf16> to vector<4x4xbf16>
    %6 = vector.extract_strided_slice %1 {offsets = [4, 0], sizes = [4, 4], strides = [1, 1]} : vector<8x4xbf16> to vector<4x4xbf16>
    %7 = tpu.concatenate %2, %3, %4, %5, %6 in 1 : vector<4x4xbf16>, vector<4x4xbf16>, vector<4x4xbf16>, vector<4x4xbf16>, vector<4x4xbf16> -> vector<4x20xbf16>
    %c0_3 = arith.constant 0 : index
    %c0_4 = arith.constant 0 : index
    %8 = vector.load %arg2[%c0_3, %c0_4] : memref<20x8xbf16, #tpu.memory_space<vmem>>, vector<20x8xbf16>
    %cst = arith.constant dense<0.000000e+00> : vector<4x8xf32>
    %9 = tpu.matmul %7, %8, %cst {dimension_numbers = #tpu.dot_dimension_numbers<[1], [0], [0], [1], [0, 0, 1, 1], [], []>} : vector<4x20xbf16>, vector<20x8xbf16>, vector<4x8xf32> -> vector<4x8xf32>
    %c0_5 = arith.constant 0 : index
    %c0_6 = arith.constant 0 : index
    %10 = vector.load %arg3[%c0_5, %c0_6] : memref<1x8xf32, #tpu.memory_space<vmem>>, vector<1x8xf32>
    %11 = vector.broadcast %10 : vector<1x8xf32> to vector<4x8xf32>
    %12 = arith.addf %9, %11 : vector<4x8xf32>
    %13 = tpu.iota {dimensions = array<i32: 0>} : vector<4x4xi32>
    %14 = tpu.iota {dimensions = array<i32: 1>} : vector<4x4xi32>
    %15 = arith.subi %13, %14 : vector<4x4xi32>
    %16 = math.absi %15 : vector<4x4xi32>
    %c1_i32 = arith.constant 1 : i32
    %17 = vector.broadcast %c1_i32 : i32 to vector<4x4xi32>
    %18 = arith.cmpi sle, %16, %17 : vector<4x4xi32>
    %cst_7 = arith.constant 0.333333343 : f32
    %cst_8 = arith.constant 0.000000e+00 : f32
    %19 = vector.broadcast %cst_7 : f32 to vector<4x4xf32>
    %20 = vector.broadcast %cst_8 : f32 to vector<4x4xf32>
    %21 = arith.select %18, %19, %20 : vector<4x4xi1>, vector<4x4xf32>
    %cst_9 = arith.constant dense<0.000000e+00> : vector<4x8xf32>
    %22 = tpu.matmul %21, %12, %cst_9 {dimension_numbers = #tpu.dot_dimension_numbers<[1], [0], [0], [1], [0, 0, 1, 1], [], []>} : vector<4x4xf32>, vector<4x8xf32>, vector<4x8xf32> -> vector<4x8xf32>
    %cst_10 = arith.constant 0.000000e+00 : f32
    %23 = vector.broadcast %cst_10 : f32 to vector<4x8xf32>
    %24 = arith.cmpf ogt, %22, %23 : vector<4x8xf32>
    %cst_11 = arith.constant 2.000000e-01 : f32
    %25 = vector.broadcast %cst_11 : f32 to vector<4x8xf32>
    %26 = arith.mulf %25, %22 : vector<4x8xf32>
    %27 = arith.select %24, %22, %26 : vector<4x8xi1>, vector<4x8xf32>
    %c0_12 = arith.constant 0 : index
    %c0_13 = arith.constant 0 : index
    %c0_14 = arith.constant 0 : index
    %28 = vector.load %arg4[%c0_12, %c0_13, %c0_14] : memref<1x4x8xf32, #tpu.memory_space<vmem>>, vector<1x4x8xf32>
    %29 = vector.shape_cast %28 : vector<1x4x8xf32> to vector<4x8xf32>
    %30 = vector.shape_cast %27 : vector<4x8xf32> to vector<1x4x8xf32>
    tpu.vector_store %arg4[%c0_12, %c0_13, %c0_14], %30 {strides = array<i32>} : memref<1x4x8xf32, #tpu.memory_space<vmem>>, vector<1x4x8xf32>,
    return
  }
  func.func @transform_0(%arg0: i32) -> (i32, i32, i32, i32) {
    %c0_i32 = arith.constant 0 : i32
    %c0_i32_0 = arith.constant 0 : i32
    %c0_i32_1 = arith.constant 0 : i32
    %c0_i32_2 = arith.constant 0 : i32
    return %arg0, %c0_i32, %c0_i32_0, %c0_i32_1 : i32, i32, i32, i32
  }
  func.func @transform_1(%arg0: i32) -> (i32, i32) {
    %c0_i32 = arith.constant 0 : i32
    %c0_i32_0 = arith.constant 0 : i32
    %c0_i32_1 = arith.constant 0 : i32
    return %c0_i32, %c0_i32_0 : i32, i32
  }
  func.func @transform_2(%arg0: i32) -> (i32, i32) {
    %c0_i32 = arith.constant 0 : i32
    %c0_i32_0 = arith.constant 0 : i32
    %c0_i32_1 = arith.constant 0 : i32
    return %c0_i32, %c0_i32_0 : i32, i32
  }
  func.func @transform_3(%arg0: i32) -> (i32, i32, i32) {
    %c0_i32 = arith.constant 0 : i32
    %c0_i32_0 = arith.constant 0 : i32
    %c0_i32_1 = arith.constant 0 : i32
    return %arg0, %c0_i32, %c0_i32_0 : i32, i32, i32
  }
}

module attributes {stable_mosaic.version = 11 : i64} {
  func.func @kernel(%arg0: i32, %arg1: memref<1x1x12x8xbf16, #tpu.memory_space<vmem>>, %arg2: memref<40x16xbf16, #tpu.memory_space<vmem>>, %arg3: memref<1x16xf32, #tpu.memory_space<vmem>>, %arg4: memref<1x8x16xf32, #tpu.memory_space<vmem>>) attributes {dimension_semantics = [#tpu.dimension_semantics<parallel>], iteration_bounds = array<i64: 2>, scalar_prefetch = 0 : i64, scratch_operands = 0 : i64, tpu.core_type = #tpu.core_type<tc>, window_params = [{transform_indices = @transform_0, window_bounds = array<i64: 1, 1, 12, 8>}, {pipeline_mode = #tpu.pipeline_mode<synchronous>, transform_indices = @transform_1, window_bounds = array<i64: 40, 16>}, {pipeline_mode = #tpu.pipeline_mode<synchronous>, transform_indices = @transform_2, window_bounds = array<i64: 1, 16>}, {transform_indices = @transform_3, window_bounds = array<i64: 1, 8, 16>}]} {
    %c0 = arith.constant 0 : index
    %c0_0 = arith.constant 0 : index
    %c0_1 = arith.constant 0 : index
    %c0_2 = arith.constant 0 : index
    %0 = vector.load %arg1[%c0, %c0_0, %c0_1, %c0_2] : memref<1x1x12x8xbf16, #tpu.memory_space<vmem>>, vector<1x1x12x8xbf16>
    %1 = vector.shape_cast %0 : vector<1x1x12x8xbf16> to vector<12x8xbf16>
    %2 = vector.extract_strided_slice %1 {offsets = [0, 0], sizes = [8, 8], strides = [1, 1]} : vector<12x8xbf16> to vector<8x8xbf16>
    %3 = vector.extract_strided_slice %1 {offsets = [1, 0], sizes = [8, 8], strides = [1, 1]} : vector<12x8xbf16> to vector<8x8xbf16>
    %4 = vector.extract_strided_slice %1 {offsets = [2, 0], sizes = [8, 8], strides = [1, 1]} : vector<12x8xbf16> to vector<8x8xbf16>
    %5 = vector.extract_strided_slice %1 {offsets = [3, 0], sizes = [8, 8], strides = [1, 1]} : vector<12x8xbf16> to vector<8x8xbf16>
    %6 = vector.extract_strided_slice %1 {offsets = [4, 0], sizes = [8, 8], strides = [1, 1]} : vector<12x8xbf16> to vector<8x8xbf16>
    %7 = tpu.concatenate %2, %3, %4, %5, %6 in 1 : vector<8x8xbf16>, vector<8x8xbf16>, vector<8x8xbf16>, vector<8x8xbf16>, vector<8x8xbf16> -> vector<8x40xbf16>
    %c0_3 = arith.constant 0 : index
    %c0_4 = arith.constant 0 : index
    %8 = vector.load %arg2[%c0_3, %c0_4] : memref<40x16xbf16, #tpu.memory_space<vmem>>, vector<40x16xbf16>
    %cst = arith.constant dense<0.000000e+00> : vector<8x16xf32>
    %9 = tpu.matmul %7, %8, %cst {dimension_numbers = #tpu.dot_dimension_numbers<[1], [0], [0], [1], [0, 0, 1, 1], [], []>} : vector<8x40xbf16>, vector<40x16xbf16>, vector<8x16xf32> -> vector<8x16xf32>
    %c0_5 = arith.constant 0 : index
    %c0_6 = arith.constant 0 : index
    %10 = vector.load %arg3[%c0_5, %c0_6] : memref<1x16xf32, #tpu.memory_space<vmem>>, vector<1x16xf32>
    %11 = vector.broadcast %10 : vector<1x16xf32> to vector<8x16xf32>
    %12 = arith.addf %9, %11 : vector<8x16xf32>
    %13 = tpu.iota {dimensions = array<i32: 0>} : vector<8x8xi32>
    %14 = tpu.iota {dimensions = array<i32: 1>} : vector<8x8xi32>
    %15 = arith.subi %13, %14 : vector<8x8xi32>
    %16 = math.absi %15 : vector<8x8xi32>
    %c1_i32 = arith.constant 1 : i32
    %17 = vector.broadcast %c1_i32 : i32 to vector<8x8xi32>
    %18 = arith.cmpi sle, %16, %17 : vector<8x8xi32>
    %cst_7 = arith.constant 0.333333343 : f32
    %cst_8 = arith.constant 0.000000e+00 : f32
    %19 = vector.broadcast %cst_7 : f32 to vector<8x8xf32>
    %20 = vector.broadcast %cst_8 : f32 to vector<8x8xf32>
    %21 = arith.select %18, %19, %20 : vector<8x8xi1>, vector<8x8xf32>
    %cst_9 = arith.constant dense<0.000000e+00> : vector<8x16xf32>
    %22 = tpu.matmul %21, %12, %cst_9 {dimension_numbers = #tpu.dot_dimension_numbers<[1], [0], [0], [1], [0, 0, 1, 1], [], []>} : vector<8x8xf32>, vector<8x16xf32>, vector<8x16xf32> -> vector<8x16xf32>
    %cst_10 = arith.constant 0.000000e+00 : f32
    %23 = vector.broadcast %cst_10 : f32 to vector<8x16xf32>
    %24 = arith.cmpf ogt, %22, %23 : vector<8x16xf32>
    %cst_11 = arith.constant 2.000000e-01 : f32
    %25 = vector.broadcast %cst_11 : f32 to vector<8x16xf32>
    %26 = arith.mulf %25, %22 : vector<8x16xf32>
    %27 = arith.select %24, %22, %26 : vector<8x16xi1>, vector<8x16xf32>
    %c0_12 = arith.constant 0 : index
    %c0_13 = arith.constant 0 : index
    %c0_14 = arith.constant 0 : index
    %28 = vector.load %arg4[%c0_12, %c0_13, %c0_14] : memref<1x8x16xf32, #tpu.memory_space<vmem>>, vector<1x8x16xf32>
    %29 = vector.shape_cast %28 : vector<1x8x16xf32> to vector<8x16xf32>
    %30 = vector.shape_cast %27 : vector<8x16xf32> to vector<1x8x16xf32>
    tpu.vector_store %arg4[%c0_12, %c0_13, %c0_14], %30 {strides = array<i32>} : memref<1x8x16xf32, #tpu.memory_space<vmem>>, vector<1x8x16xf32>,
    return
  }
  func.func @transform_0(%arg0: i32) -> (i32, i32, i32, i32) {
    %c0_i32 = arith.constant 0 : i32
    %c0_i32_0 = arith.constant 0 : i32
    %c0_i32_1 = arith.constant 0 : i32
    %c0_i32_2 = arith.constant 0 : i32
    return %arg0, %c0_i32, %c0_i32_0, %c0_i32_1 : i32, i32, i32, i32
  }
  func.func @transform_1(%arg0: i32) -> (i32, i32) {
    %c0_i32 = arith.constant 0 : i32
    %c0_i32_0 = arith.constant 0 : i32
    %c0_i32_1 = arith.constant 0 : i32
    return %c0_i32, %c0_i32_0 : i32, i32
  }
  func.func @transform_2(%arg0: i32) -> (i32, i32) {
    %c0_i32 = arith.constant 0 : i32
    %c0_i32_0 = arith.constant 0 : i32
    %c0_i32_1 = arith.constant 0 : i32
    return %c0_i32, %c0_i32_0 : i32, i32
  }
  func.func @transform_3(%arg0: i32) -> (i32, i32, i32) {
    %c0_i32 = arith.constant 0 : i32
    %c0_i32_0 = arith.constant 0 : i32
    %c0_i32_1 = arith.constant 0 : i32
    return %arg0, %c0_i32, %c0_i32_0 : i32, i32, i32
  }
}

module attributes {stable_mosaic.version = 11 : i64} {
  func.func @kernel(%arg0: i32, %arg1: memref<1x1x12x8xbf16, #tpu.memory_space<vmem>>, %arg2: memref<40x8xbf16, #tpu.memory_space<vmem>>, %arg3: memref<1x8xf32, #tpu.memory_space<vmem>>, %arg4: memref<1x8x8xf32, #tpu.memory_space<vmem>>) attributes {dimension_semantics = [#tpu.dimension_semantics<parallel>], iteration_bounds = array<i64: 2>, scalar_prefetch = 0 : i64, scratch_operands = 0 : i64, tpu.core_type = #tpu.core_type<tc>, window_params = [{transform_indices = @transform_0, window_bounds = array<i64: 1, 1, 12, 8>}, {pipeline_mode = #tpu.pipeline_mode<synchronous>, transform_indices = @transform_1, window_bounds = array<i64: 40, 8>}, {pipeline_mode = #tpu.pipeline_mode<synchronous>, transform_indices = @transform_2, window_bounds = array<i64: 1, 8>}, {transform_indices = @transform_3, window_bounds = array<i64: 1, 8, 8>}]} {
    %c0 = arith.constant 0 : index
    %c0_0 = arith.constant 0 : index
    %c0_1 = arith.constant 0 : index
    %c0_2 = arith.constant 0 : index
    %0 = vector.load %arg1[%c0, %c0_0, %c0_1, %c0_2] : memref<1x1x12x8xbf16, #tpu.memory_space<vmem>>, vector<1x1x12x8xbf16>
    %1 = vector.shape_cast %0 : vector<1x1x12x8xbf16> to vector<12x8xbf16>
    %2 = vector.extract_strided_slice %1 {offsets = [0, 0], sizes = [8, 8], strides = [1, 1]} : vector<12x8xbf16> to vector<8x8xbf16>
    %3 = vector.extract_strided_slice %1 {offsets = [1, 0], sizes = [8, 8], strides = [1, 1]} : vector<12x8xbf16> to vector<8x8xbf16>
    %4 = vector.extract_strided_slice %1 {offsets = [2, 0], sizes = [8, 8], strides = [1, 1]} : vector<12x8xbf16> to vector<8x8xbf16>
    %5 = vector.extract_strided_slice %1 {offsets = [3, 0], sizes = [8, 8], strides = [1, 1]} : vector<12x8xbf16> to vector<8x8xbf16>
    %6 = vector.extract_strided_slice %1 {offsets = [4, 0], sizes = [8, 8], strides = [1, 1]} : vector<12x8xbf16> to vector<8x8xbf16>
    %7 = tpu.concatenate %2, %3, %4, %5, %6 in 1 : vector<8x8xbf16>, vector<8x8xbf16>, vector<8x8xbf16>, vector<8x8xbf16>, vector<8x8xbf16> -> vector<8x40xbf16>
    %c0_3 = arith.constant 0 : index
    %c0_4 = arith.constant 0 : index
    %8 = vector.load %arg2[%c0_3, %c0_4] : memref<40x8xbf16, #tpu.memory_space<vmem>>, vector<40x8xbf16>
    %cst = arith.constant dense<0.000000e+00> : vector<8x8xf32>
    %9 = tpu.matmul %7, %8, %cst {dimension_numbers = #tpu.dot_dimension_numbers<[1], [0], [0], [1], [0, 0, 1, 1], [], []>} : vector<8x40xbf16>, vector<40x8xbf16>, vector<8x8xf32> -> vector<8x8xf32>
    %c0_5 = arith.constant 0 : index
    %c0_6 = arith.constant 0 : index
    %10 = vector.load %arg3[%c0_5, %c0_6] : memref<1x8xf32, #tpu.memory_space<vmem>>, vector<1x8xf32>
    %11 = vector.broadcast %10 : vector<1x8xf32> to vector<8x8xf32>
    %12 = arith.addf %9, %11 : vector<8x8xf32>
    %13 = tpu.iota {dimensions = array<i32: 0>} : vector<8x8xi32>
    %14 = tpu.iota {dimensions = array<i32: 1>} : vector<8x8xi32>
    %15 = arith.subi %13, %14 : vector<8x8xi32>
    %16 = math.absi %15 : vector<8x8xi32>
    %c1_i32 = arith.constant 1 : i32
    %17 = vector.broadcast %c1_i32 : i32 to vector<8x8xi32>
    %18 = arith.cmpi sle, %16, %17 : vector<8x8xi32>
    %cst_7 = arith.constant 0.333333343 : f32
    %cst_8 = arith.constant 0.000000e+00 : f32
    %19 = vector.broadcast %cst_7 : f32 to vector<8x8xf32>
    %20 = vector.broadcast %cst_8 : f32 to vector<8x8xf32>
    %21 = arith.select %18, %19, %20 : vector<8x8xi1>, vector<8x8xf32>
    %cst_9 = arith.constant dense<0.000000e+00> : vector<8x8xf32>
    %22 = tpu.matmul %21, %12, %cst_9 {dimension_numbers = #tpu.dot_dimension_numbers<[1], [0], [0], [1], [0, 0, 1, 1], [], []>} : vector<8x8xf32>, vector<8x8xf32>, vector<8x8xf32> -> vector<8x8xf32>
    %cst_10 = arith.constant 0.000000e+00 : f32
    %23 = vector.broadcast %cst_10 : f32 to vector<8x8xf32>
    %24 = arith.cmpf ogt, %22, %23 : vector<8x8xf32>
    %cst_11 = arith.constant 2.000000e-01 : f32
    %25 = vector.broadcast %cst_11 : f32 to vector<8x8xf32>
    %26 = arith.mulf %25, %22 : vector<8x8xf32>
    %27 = arith.select %24, %22, %26 : vector<8x8xi1>, vector<8x8xf32>
    %c0_12 = arith.constant 0 : index
    %c0_13 = arith.constant 0 : index
    %c0_14 = arith.constant 0 : index
    %28 = vector.load %arg4[%c0_12, %c0_13, %c0_14] : memref<1x8x8xf32, #tpu.memory_space<vmem>>, vector<1x8x8xf32>
    %29 = vector.shape_cast %28 : vector<1x8x8xf32> to vector<8x8xf32>
    %30 = vector.shape_cast %27 : vector<8x8xf32> to vector<1x8x8xf32>
    tpu.vector_store %arg4[%c0_12, %c0_13, %c0_14], %30 {strides = array<i32>} : memref<1x8x8xf32, #tpu.memory_space<vmem>>, vector<1x8x8xf32>,
    return
  }
  func.func @transform_0(%arg0: i32) -> (i32, i32, i32, i32) {
    %c0_i32 = arith.constant 0 : i32
    %c0_i32_0 = arith.constant 0 : i32
    %c0_i32_1 = arith.constant 0 : i32
    %c0_i32_2 = arith.constant 0 : i32
    return %arg0, %c0_i32, %c0_i32_0, %c0_i32_1 : i32, i32, i32, i32
  }
  func.func @transform_1(%arg0: i32) -> (i32, i32) {
    %c0_i32 = arith.constant 0 : i32
    %c0_i32_0 = arith.constant 0 : i32
    %c0_i32_1 = arith.constant 0 : i32
    return %c0_i32, %c0_i32_0 : i32, i32
  }
  func.func @transform_2(%arg0: i32) -> (i32, i32) {
    %c0_i32 = arith.constant 0 : i32
    %c0_i32_0 = arith.constant 0 : i32
    %c0_i32_1 = arith.constant 0 : i32
    return %c0_i32, %c0_i32_0 : i32, i32
  }
  func.func @transform_3(%arg0: i32) -> (i32, i32, i32) {
    %c0_i32 = arith.constant 0 : i32
    %c0_i32_0 = arith.constant 0 : i32
    %c0_i32_1 = arith.constant 0 : i32
    return %arg0, %c0_i32, %c0_i32_0 : i32, i32, i32
  }
}

module attributes {stable_mosaic.version = 11 : i64} {
  func.func @kernel(%arg0: i32, %arg1: memref<1x1x20x16xbf16, #tpu.memory_space<vmem>>, %arg2: memref<80x16xbf16, #tpu.memory_space<vmem>>, %arg3: memref<1x16xf32, #tpu.memory_space<vmem>>, %arg4: memref<1x16x16xf32, #tpu.memory_space<vmem>>) attributes {dimension_semantics = [#tpu.dimension_semantics<parallel>], iteration_bounds = array<i64: 2>, scalar_prefetch = 0 : i64, scratch_operands = 0 : i64, tpu.core_type = #tpu.core_type<tc>, window_params = [{transform_indices = @transform_0, window_bounds = array<i64: 1, 1, 20, 16>}, {pipeline_mode = #tpu.pipeline_mode<synchronous>, transform_indices = @transform_1, window_bounds = array<i64: 80, 16>}, {pipeline_mode = #tpu.pipeline_mode<synchronous>, transform_indices = @transform_2, window_bounds = array<i64: 1, 16>}, {transform_indices = @transform_3, window_bounds = array<i64: 1, 16, 16>}]} {
    %c0 = arith.constant 0 : index
    %c0_0 = arith.constant 0 : index
    %c0_1 = arith.constant 0 : index
    %c0_2 = arith.constant 0 : index
    %0 = vector.load %arg1[%c0, %c0_0, %c0_1, %c0_2] : memref<1x1x20x16xbf16, #tpu.memory_space<vmem>>, vector<1x1x20x16xbf16>
    %1 = vector.shape_cast %0 : vector<1x1x20x16xbf16> to vector<20x16xbf16>
    %2 = vector.extract_strided_slice %1 {offsets = [0, 0], sizes = [16, 16], strides = [1, 1]} : vector<20x16xbf16> to vector<16x16xbf16>
    %3 = vector.extract_strided_slice %1 {offsets = [1, 0], sizes = [16, 16], strides = [1, 1]} : vector<20x16xbf16> to vector<16x16xbf16>
    %4 = vector.extract_strided_slice %1 {offsets = [2, 0], sizes = [16, 16], strides = [1, 1]} : vector<20x16xbf16> to vector<16x16xbf16>
    %5 = vector.extract_strided_slice %1 {offsets = [3, 0], sizes = [16, 16], strides = [1, 1]} : vector<20x16xbf16> to vector<16x16xbf16>
    %6 = vector.extract_strided_slice %1 {offsets = [4, 0], sizes = [16, 16], strides = [1, 1]} : vector<20x16xbf16> to vector<16x16xbf16>
    %7 = tpu.concatenate %2, %3, %4, %5, %6 in 1 : vector<16x16xbf16>, vector<16x16xbf16>, vector<16x16xbf16>, vector<16x16xbf16>, vector<16x16xbf16> -> vector<16x80xbf16>
    %c0_3 = arith.constant 0 : index
    %c0_4 = arith.constant 0 : index
    %8 = vector.load %arg2[%c0_3, %c0_4] : memref<80x16xbf16, #tpu.memory_space<vmem>>, vector<80x16xbf16>
    %cst = arith.constant dense<0.000000e+00> : vector<16x16xf32>
    %9 = tpu.matmul %7, %8, %cst {dimension_numbers = #tpu.dot_dimension_numbers<[1], [0], [0], [1], [0, 0, 1, 1], [], []>} : vector<16x80xbf16>, vector<80x16xbf16>, vector<16x16xf32> -> vector<16x16xf32>
    %c0_5 = arith.constant 0 : index
    %c0_6 = arith.constant 0 : index
    %10 = vector.load %arg3[%c0_5, %c0_6] : memref<1x16xf32, #tpu.memory_space<vmem>>, vector<1x16xf32>
    %11 = vector.broadcast %10 : vector<1x16xf32> to vector<16x16xf32>
    %12 = arith.addf %9, %11 : vector<16x16xf32>
    %13 = tpu.iota {dimensions = array<i32: 0>} : vector<16x16xi32>
    %14 = tpu.iota {dimensions = array<i32: 1>} : vector<16x16xi32>
    %15 = arith.subi %13, %14 : vector<16x16xi32>
    %16 = math.absi %15 : vector<16x16xi32>
    %c1_i32 = arith.constant 1 : i32
    %17 = vector.broadcast %c1_i32 : i32 to vector<16x16xi32>
    %18 = arith.cmpi sle, %16, %17 : vector<16x16xi32>
    %cst_7 = arith.constant 0.333333343 : f32
    %cst_8 = arith.constant 0.000000e+00 : f32
    %19 = vector.broadcast %cst_7 : f32 to vector<16x16xf32>
    %20 = vector.broadcast %cst_8 : f32 to vector<16x16xf32>
    %21 = arith.select %18, %19, %20 : vector<16x16xi1>, vector<16x16xf32>
    %cst_9 = arith.constant dense<0.000000e+00> : vector<16x16xf32>
    %22 = tpu.matmul %21, %12, %cst_9 {dimension_numbers = #tpu.dot_dimension_numbers<[1], [0], [0], [1], [0, 0, 1, 1], [], []>} : vector<16x16xf32>, vector<16x16xf32>, vector<16x16xf32> -> vector<16x16xf32>
    %cst_10 = arith.constant 0.000000e+00 : f32
    %23 = vector.broadcast %cst_10 : f32 to vector<16x16xf32>
    %24 = arith.cmpf ogt, %22, %23 : vector<16x16xf32>
    %cst_11 = arith.constant 2.000000e-01 : f32
    %25 = vector.broadcast %cst_11 : f32 to vector<16x16xf32>
    %26 = arith.mulf %25, %22 : vector<16x16xf32>
    %27 = arith.select %24, %22, %26 : vector<16x16xi1>, vector<16x16xf32>
    %c0_12 = arith.constant 0 : index
    %c0_13 = arith.constant 0 : index
    %c0_14 = arith.constant 0 : index
    %28 = vector.load %arg4[%c0_12, %c0_13, %c0_14] : memref<1x16x16xf32, #tpu.memory_space<vmem>>, vector<1x16x16xf32>
    %29 = vector.shape_cast %28 : vector<1x16x16xf32> to vector<16x16xf32>
    %30 = vector.shape_cast %27 : vector<16x16xf32> to vector<1x16x16xf32>
    tpu.vector_store %arg4[%c0_12, %c0_13, %c0_14], %30 {strides = array<i32>} : memref<1x16x16xf32, #tpu.memory_space<vmem>>, vector<1x16x16xf32>,
    return
  }
  func.func @transform_0(%arg0: i32) -> (i32, i32, i32, i32) {
    %c0_i32 = arith.constant 0 : i32
    %c0_i32_0 = arith.constant 0 : i32
    %c0_i32_1 = arith.constant 0 : i32
    %c0_i32_2 = arith.constant 0 : i32
    return %arg0, %c0_i32, %c0_i32_0, %c0_i32_1 : i32, i32, i32, i32
  }
  func.func @transform_1(%arg0: i32) -> (i32, i32) {
    %c0_i32 = arith.constant 0 : i32
    %c0_i32_0 = arith.constant 0 : i32
    %c0_i32_1 = arith.constant 0 : i32
    return %c0_i32, %c0_i32_0 : i32, i32
  }
  func.func @transform_2(%arg0: i32) -> (i32, i32) {
    %c0_i32 = arith.constant 0 : i32
    %c0_i32_0 = arith.constant 0 : i32
    %c0_i32_1 = arith.constant 0 : i32
    return %c0_i32, %c0_i32_0 : i32, i32
  }
  func.func @transform_3(%arg0: i32) -> (i32, i32, i32) {
    %c0_i32 = arith.constant 0 : i32
    %c0_i32_0 = arith.constant 0 : i32
    %c0_i32_1 = arith.constant 0 : i32
    return %arg0, %c0_i32, %c0_i32_0 : i32, i32, i32
  }
}

module attributes {stable_mosaic.version = 11 : i64} {
  func.func @kernel(%arg0: i32, %arg1: memref<1x1x20x16xbf16, #tpu.memory_space<vmem>>, %arg2: memref<80x16xbf16, #tpu.memory_space<vmem>>, %arg3: memref<1x16xf32, #tpu.memory_space<vmem>>, %arg4: memref<1x16x16xf32, #tpu.memory_space<vmem>>) attributes {dimension_semantics = [#tpu.dimension_semantics<parallel>], iteration_bounds = array<i64: 2>, scalar_prefetch = 0 : i64, scratch_operands = 0 : i64, tpu.core_type = #tpu.core_type<tc>, window_params = [{transform_indices = @transform_0, window_bounds = array<i64: 1, 1, 20, 16>}, {pipeline_mode = #tpu.pipeline_mode<synchronous>, transform_indices = @transform_1, window_bounds = array<i64: 80, 16>}, {pipeline_mode = #tpu.pipeline_mode<synchronous>, transform_indices = @transform_2, window_bounds = array<i64: 1, 16>}, {transform_indices = @transform_3, window_bounds = array<i64: 1, 16, 16>}]} {
    %c0 = arith.constant 0 : index
    %c0_0 = arith.constant 0 : index
    %c0_1 = arith.constant 0 : index
    %c0_2 = arith.constant 0 : index
    %0 = vector.load %arg1[%c0, %c0_0, %c0_1, %c0_2] : memref<1x1x20x16xbf16, #tpu.memory_space<vmem>>, vector<1x1x20x16xbf16>
    %1 = vector.shape_cast %0 : vector<1x1x20x16xbf16> to vector<20x16xbf16>
    %2 = vector.extract_strided_slice %1 {offsets = [0, 0], sizes = [16, 16], strides = [1, 1]} : vector<20x16xbf16> to vector<16x16xbf16>
    %3 = vector.extract_strided_slice %1 {offsets = [1, 0], sizes = [16, 16], strides = [1, 1]} : vector<20x16xbf16> to vector<16x16xbf16>
    %4 = vector.extract_strided_slice %1 {offsets = [2, 0], sizes = [16, 16], strides = [1, 1]} : vector<20x16xbf16> to vector<16x16xbf16>
    %5 = vector.extract_strided_slice %1 {offsets = [3, 0], sizes = [16, 16], strides = [1, 1]} : vector<20x16xbf16> to vector<16x16xbf16>
    %6 = vector.extract_strided_slice %1 {offsets = [4, 0], sizes = [16, 16], strides = [1, 1]} : vector<20x16xbf16> to vector<16x16xbf16>
    %7 = tpu.concatenate %2, %3, %4, %5, %6 in 1 : vector<16x16xbf16>, vector<16x16xbf16>, vector<16x16xbf16>, vector<16x16xbf16>, vector<16x16xbf16> -> vector<16x80xbf16>
    %c0_3 = arith.constant 0 : index
    %c0_4 = arith.constant 0 : index
    %8 = vector.load %arg2[%c0_3, %c0_4] : memref<80x16xbf16, #tpu.memory_space<vmem>>, vector<80x16xbf16>
    %cst = arith.constant dense<0.000000e+00> : vector<16x16xf32>
    %9 = tpu.matmul %7, %8, %cst {dimension_numbers = #tpu.dot_dimension_numbers<[1], [0], [0], [1], [0, 0, 1, 1], [], []>} : vector<16x80xbf16>, vector<80x16xbf16>, vector<16x16xf32> -> vector<16x16xf32>
    %c0_5 = arith.constant 0 : index
    %c0_6 = arith.constant 0 : index
    %10 = vector.load %arg3[%c0_5, %c0_6] : memref<1x16xf32, #tpu.memory_space<vmem>>, vector<1x16xf32>
    %11 = vector.broadcast %10 : vector<1x16xf32> to vector<16x16xf32>
    %12 = arith.addf %9, %11 : vector<16x16xf32>
    %c0_7 = arith.constant 0 : index
    %c0_8 = arith.constant 0 : index
    %c0_9 = arith.constant 0 : index
    %13 = vector.load %arg4[%c0_7, %c0_8, %c0_9] : memref<1x16x16xf32, #tpu.memory_space<vmem>>, vector<1x16x16xf32>
    %14 = vector.shape_cast %13 : vector<1x16x16xf32> to vector<16x16xf32>
    %15 = vector.shape_cast %12 : vector<16x16xf32> to vector<1x16x16xf32>
    tpu.vector_store %arg4[%c0_7, %c0_8, %c0_9], %15 {strides = array<i32>} : memref<1x16x16xf32, #tpu.memory_space<vmem>>, vector<1x16x16xf32>,
    return
  }
  func.func @transform_0(%arg0: i32) -> (i32, i32, i32, i32) {
    %c0_i32 = arith.constant 0 : i32
    %c0_i32_0 = arith.constant 0 : i32
    %c0_i32_1 = arith.constant 0 : i32
    %c0_i32_2 = arith.constant 0 : i32
    return %arg0, %c0_i32, %c0_i32_0, %c0_i32_1 : i32, i32, i32, i32
  }
  func.func @transform_1(%arg0: i32) -> (i32, i32) {
    %c0_i32 = arith.constant 0 : i32
    %c0_i32_0 = arith.constant 0 : i32
    %c0_i32_1 = arith.constant 0 : i32
    return %c0_i32, %c0_i32_0 : i32, i32
  }
  func.func @transform_2(%arg0: i32) -> (i32, i32) {
    %c0_i32 = arith.constant 0 : i32
    %c0_i32_0 = arith.constant 0 : i32
    %c0_i32_1 = arith.constant 0 : i32
    return %c0_i32, %c0_i32_0 : i32, i32
  }
  func.func @transform_3(%arg0: i32) -> (i32, i32, i32) {
    %c0_i32 = arith.constant 0 : i32
    %c0_i32_0 = arith.constant 0 : i32
    %c0_i32_1 = arith.constant 0 : i32
    return %arg0, %c0_i32, %c0_i32_0 : i32, i32, i32
  }
}

</mosaic_0001>

<bundles_post_ra>
// kernel: _lambda_.12
= control target key start
LH: loop header
LB: loop body
LE: loop exit
PB: predicated region body
PF: predicated region fallthrough
CT: control target
= control target key end

     0   :  { %s468_s12 = smov 0   ;;  %s509_s0 = inlined_call_operand.vmem [shape: bf16[2,2,10,16], index: 0, kind: input, shape index: {}]   ;;  %s510_s1 = inlined_call_operand.vmem [shape: bf16[80,16], index: 1, kind: input, shape index: {}]   ;;  %s511_s2 = inlined_call_operand.vmem [shape: f32[1,16], index: 2, kind: input, shape index: {}]   ;;  %s512_s3 = inlined_call_operand.vmem [shape: f32[2,8,16], index: 3, kind: output, shape index: {}]  }
   0x1 LB: > { %s369_s13 = sadd.s32 4294967295, %s440_s12   ;;  %p373_p0 = scmp.ge.s32.totalorder %s440_s12, 1  ;;  %s440_s12 = sphi %s468_s12, %s13_s12  }
   0x2   : > { %p137_p1 = scmp.lt.s32.totalorder %s440_s12, 3 }
   0x4   : > { %p138_p2 = pnand %p373_p0, %p137_p1 }
   0x5   : > { %p160_p3 = scmp.lt.s32.totalorder (!%p138_p2), %s369_s13, 1  ;;  %s444_s24 = smov (!%p138_p2), 16  }
   0x6   : > { %141 = sbr.rel (%p138_p2) target bundleno = 342 (0x156), region = 32  ;;  %s445_s29 = smov (!%p138_p2), 48  }
   0x7   : > { %s446_s30 = smov (!%p138_p2), 32   ;;  %s447_s4 = smov (!%p138_p2), 64  }
   0xb   : > { %v429_v0 = vld [vmem:[%s510_s1 + $0x20] sm:$0xff]   ;;  %v442_v1 = vmov 0.0   ;;  %s514_s13 = smov (!%p160_p3, %s369_s13), 1  ;;  %v430_v2 = vld [vmem:[%s510_s1 + $0x18] sm:$0xff]   ;;  %v431_v3 = vld [vmem:[%s510_s1 + $0x10] sm:$0xff]   ;;  %vm443_vm0 = vmmov 0  }
   0xc   : > { %398 = vmatprep.subr.bf16.mxu0 %v442_v1  ;;  %s391_s18 = sshll.u32 %s514_s13, 4  ;;  %408 = vmatprep.mubr.msk.bf16.mxu0 %vm443_vm0, %v442_v1  ;;  %v432_v15 = vld [vmem:[%s510_s1 + $0x8] sm:$0xff]   ;;  %v433_v20 = vld [vmem:[%s510_s1] sm:$0xff]   ;;  %vm209_vm1 = vcmask 130048   ;;  %vm213_vm2 = vcmask 261120   ;;  %vm216_vm3 = vcmask 392192  }
   0xd   : > { %399 = vmatpush3.bf16.msra.mxu0 %v429_v0  ;;  %s164_s21 = scalar_lea.vmem %s509_s0, %s391_s18  ;;  %vm219_vm4 = vcmask 523264   ;;  %vm269_vm5 = vcmask 654336   ;;  %v382_v30 = vld [vmem:[%s511_s2] ss:$0 sm:$0xff]  ;;  %s376_s7 = sshll.u32 %s514_s13, 3 }
   0xe   : > { %400 = vmatprep.subr.bf16.mxu0 %v442_v1  ;;  %v377_v4 = vld [vmem:[%s164_s21 + $0x8] sm:$0xf]  ;;  %v378_v5 = vld [vmem:[%s164_s21 + $0xc] sm:$0x1]  ;;  %v170_v6 = vld [vmem:[%s164_s21] sm:$0xf]  ;;  %s168_s10 = scalar_lea.vmem %s512_s3, %s376_s7 }
   0xf   : > { %v379_v7 = vcombine.low %v377_v4, %v377_v4  ;;  %v381_v8 = vcombine.low %v377_v4, %v378_v5  ;;  %v171_v9 = vld [vmem:[%s164_s21 + $0x4] sm:$0x1] }
  0x10   : > { %v380_v10 = vcombine.low %v170_v6, %v171_v9 }
  0x11   : > { %401 = vmatpush3.bf16.msra.mxu0 %v430_v2  ;;  %178 = vrot.lane.b32.xlu0 %v379_v7, %s444_s24  ;;  %v198_v11 = vshrl.u32 %v381_v8, 16  ;;  %v200_v12 = vshll.u32 %v381_v8, 16 }
  0x12   : > { %402 = vmatprep.subr.bf16.mxu0 %v442_v1  ;;  %v186_v13 = vshrl.u32 %v380_v10, 16  ;;  %v188_v14 = vshll.u32 %v380_v10, 16  ;;  %v206_v21 = vrot.slane %v380_v10, 1 }
  0x13   : > { %v202_v16 = vrot.slane %v200_v12, 1 }
  0x14   : > { %v190_v17 = vrot.slane %v188_v14, 1 }
  0x15   : > { %403 = vmatpush3.bf16.msra.mxu0 %v431_v3  ;;  %v203_v18 = vor.u32 %v202_v16, %v198_v11 }
  0x16   : > { %404 = vmatprep.subr.bf16.mxu0 %v442_v1  ;;  %v191_v19 = vor.u32 %v190_v17, %v186_v13 }
  0x17   : > { %204 = vrot.lane.b32.xlu1 %v203_v18, %s445_s29 }
  0x18   : > { %192 = vrot.lane.b32.xlu0 %v191_v19, %s446_s30 }
  0x19   : > { %405 = vmatpush3.bf16.msra.mxu0 %v432_v15 }
  0x1a   : > { %406 = vmatprep.subr.bf16.mxu0 %v442_v1 }
  0x1b   : > { %207 = vrot.lane.b32.xlu1 %v206_v21, %s447_s4 }
  0x1d   : > { %407 = vmatpush3.bf16.msra.mxu0 %v433_v20 }
  0x83   : > { %v179_v22 = vpop.permute.xlu0 %178 }
  0x84   : > { %v212_v23 = vsel %vm209_vm1, %v170_v6, %v179_v22 }
  0x89   : > { %v205_v24 = vpop.permute.xlu1 %204 }
  0x8a   : > { %v193_v25 = vpop.permute.xlu0 %192 }
  0x8b   : > { %v215_v26 = vsel %vm213_vm2, %v212_v23, %v193_v25 }
  0x8c   : > { %v218_v28 = vsel %vm216_vm3, %v215_v26, %v205_v24 }
  0x8d   : > { %v208_v27 = vpop.permute.xlu1 %207 }
  0x8e   : > { %v221_v29 = vsel %vm219_vm4, %v218_v28, %v208_v27 }
  0x8f   : > { %409 = vmatmul.mubr.msk.bf16.vlgmr.msra.gmra.mxu0 %vm269_vm5, %v221_v29 }
 0x14f   : > { %v306_v31 = vpop.f32.mrf.mxu0 }
 0x150   : > { %v307_v32 = vadd.f32 %v382_v30, %v306_v31 }
 0x151   : > { %v410_v33 = vpop.f32.mrf.mxu0 }
 0x152   : > { %vm312_vm6 = vcmp.gt.f32.partialorder %v307_v32, 0.0  ;;  %v313_v34 = vmul.f32 0.2, %v307_v32 }
 0x153   : > { %v309_v35 = vpop.f32.mrf.mxu0 }
 0x154   : > { %v314_v36 = vsel %vm312_vm6, %v307_v32, %v313_v34 }
 0x155   : > { %315 = vst.msk [vmem:[%s168_s10] sm:$0xff] %vm209_vm1, %v314_v36  ;;  %v411_v37 = vpop.f32.mrf.mxu0 }
 0x156 PF: > { %s13_s12 = sadd.s32 1, %s440_s12  }
 0x157   : > { %p10_p4 = scmp.ge.s32.totalorder %s13_s12, 4  }
 0x159   :  { %12 = sbr.rel (!%p10_p4) target bundleno = 1 (0x1), region = 63 }

// kernel: _lambda_.11
= control target key start
LH: loop header
LB: loop body
LE: loop exit
PB: predicated region body
PF: predicated region fallthrough
CT: control target
= control target key end

     0   :  { %s484_s12 = smov 0   ;;  %s527_s0 = inlined_call_operand.vmem [shape: bf16[2,1,20,16], index: 0, kind: input, shape index: {}]   ;;  %s528_s1 = inlined_call_operand.vmem [shape: bf16[80,16], index: 1, kind: input, shape index: {}]   ;;  %s529_s2 = inlined_call_operand.vmem [shape: f32[1,16], index: 2, kind: input, shape index: {}]   ;;  %s530_s3 = inlined_call_operand.vmem [shape: f32[2,16,16], index: 3, kind: output, shape index: {}]  }
   0x1 LB: > { %s388_s13 = sadd.s32 4294967295, %s456_s12   ;;  %p392_p0 = scmp.ge.s32.totalorder %s456_s12, 1  ;;  %s456_s12 = sphi %s484_s12, %s13_s12  }
   0x2   : > { %p137_p1 = scmp.lt.s32.totalorder %s456_s12, 3 }
   0x4   : > { %p138_p2 = pnand %p392_p0, %p137_p1 }
   0x5   : > { %p161_p3 = scmp.lt.s32.totalorder (!%p138_p2), %s388_s13, 1  ;;  %s460_s28 = smov (!%p138_p2), 16  }
   0x6   : > { %141 = sbr.rel (%p138_p2) target bundleno = 348 (0x15c), region = 32  ;;  %s461_s29 = smov (!%p138_p2), 48  }
   0x7   : > { %s462_s30 = smov (!%p138_p2), 32   ;;  %s463_s4 = smov (!%p138_p2), 64  }
   0xb   : > { %v445_v0 = vld [vmem:[%s528_s1 + $0x20] sm:$0xff]   ;;  %s532_s13 = smov (!%p161_p3, %s388_s13), 1  ;;  %v458_v1 = vmov 0.0   ;;  %v446_v2 = vld [vmem:[%s528_s1 + $0x18] sm:$0xff]   ;;  %v447_v3 = vld [vmem:[%s528_s1 + $0x10] sm:$0xff]   ;;  %vm459_vm0 = vmmov 0  }
   0xc   : > { %414 = vmatprep.subr.bf16.mxu0 %v458_v1  ;;  %s428_s18 = smul.u32 12, %s532_s13  ;;  %424 = vmatprep.mubr.msk.bf16.mxu0 %vm459_vm0, %v458_v1  ;;  %v448_v10 = vld [vmem:[%s528_s1 + $0x8] sm:$0xff]   ;;  %vm183_vm1 = vsmask.f32 7424  ;;  %vm204_vm2 = vsmask.f32 6400 }
   0xd   : > { %415 = vmatpush3.bf16.msra.mxu0 %v445_v0  ;;  %vm198_vm3 = vcmask 1046528   ;;  %v449_v24 = vld [vmem:[%s528_s1] sm:$0xff]   ;;  %vm216_vm4 = vcmask 1045504   ;;  %vm222_vm5 = vcmask 130048   ;;  %vm225_vm6 = vcmask 261120   ;;  %s407_s7 = sshll.u32 %s532_s13, 4 }
   0xe   : > { %416 = vmatprep.subr.bf16.mxu0 %v458_v1  ;;  %s165_s21 = scalar_lea.vmem %s527_s0, %s428_s18  ;;  %vm228_vm7 = vcmask 392192   ;;  %vm231_vm8 = vcmask 523264   ;;  %vm281_vm9 = vcmask 654336   ;;  %v398_v37 = vld [vmem:[%s529_s2] ss:$0 sm:$0xff]  ;;  %s170_s10 = scalar_lea.vmem %s530_s3, %s407_s7 }
   0xf   : > { %v443_v4 = vld [vmem:[%s165_s21] sm:$0xff]   ;;  %v444_v5 = vld [vmem:[%s165_s21 + $0x8] ss:$0 sps:$4 sm:$0x33]  }
  0x10   : > { %v185_v6 = vshrl.u32 %v443_v4, 16  ;;  %v187_v7 = vshll.u32 %v443_v4, 16  ;;  %v192_v8 = vshll.u32 %v444_v5, 16  ;;  %v208_v9 = vshrl.u32 %v444_v5, 16 }
  0x11   : > { %417 = vmatpush3.bf16.msra.mxu0 %v446_v2  ;;  %v199_v19 = vrot.slane %v443_v4, 1  ;;  %v200_v20 = vrot.slane %v444_v5, 1  ;;  %v217_v22 = vrot.slane %v443_v4, 2  ;;  %v218_v23 = vrot.slane %v444_v5, 2 }
  0x12   : > { %418 = vmatprep.subr.bf16.mxu0 %v458_v1  ;;  %v189_v11 = vrot.slane %v187_v7, 1  ;;  %v194_v12 = vrot.slane %v192_v8, 1  ;;  %v205_v13 = vrot.slane %v185_v6, 1  ;;  %v206_v14 = vrot.slane %v187_v7, 2 }
  0x13   : > { %v210_v15 = vrot.slane %v208_v9, 1  ;;  %v211_v16 = vrot.slane %v192_v8, 2  ;;  %v201_v27 = vsel %vm198_vm3, %v199_v19, %v200_v20  ;;  %v219_v28 = vsel %vm216_vm4, %v217_v22, %v218_v23 }
  0x14   : > { %v190_v17 = vor.u32 %v189_v11, %v185_v6  ;;  %v207_v18 = vor.u32 %v206_v14, %v205_v13 }
  0x15   : > { %419 = vmatpush3.bf16.msra.mxu0 %v447_v3  ;;  %v212_v21 = vor.u32 %v211_v16, %v210_v15 }
  0x16   : > { %420 = vmatprep.subr.bf16.mxu0 %v458_v1  ;;  %v195_v25 = vsel %vm183_vm1, %v190_v17, %v194_v12 }
  0x17   : > { %196 = vrot.lane.b32.xlu0 %v195_v25, %s460_s28  ;;  %v213_v26 = vsel %vm204_vm2, %v207_v18, %v212_v21 }
  0x18   : > { %214 = vrot.lane.b32.xlu1 %v213_v26, %s461_s29 }
  0x19   : > { %421 = vmatpush3.bf16.msra.mxu0 %v448_v10 }
  0x1a   : > { %422 = vmatprep.subr.bf16.mxu0 %v458_v1 }
  0x1b   : > { %202 = vrot.lane.b32.xlu0 %v201_v27, %s462_s30 }
  0x1c   : > { %220 = vrot.lane.b32.xlu1 %v219_v28, %s463_s4 }
  0x1d   : > { %423 = vmatpush3.bf16.msra.mxu0 %v449_v24 }
  0x89   : > { %v197_v29 = vpop.permute.xlu0 %196 }
  0x8a   : > { %v215_v30 = vpop.permute.xlu1 %214  ;;  %v224_v31 = vsel %vm222_vm5, %v443_v4, %v197_v29 }
  0x8d   : > { %v203_v32 = vpop.permute.xlu0 %202 }
  0x8e   : > { %v227_v33 = vsel %vm225_vm6, %v224_v31, %v203_v32  ;;  %v221_v34 = vpop.permute.xlu1 %220 }
  0x8f   : > { %v230_v35 = vsel %vm228_vm7, %v227_v33, %v215_v30 }
  0x90   : > { %v233_v36 = vsel %vm231_vm8, %v230_v35, %v221_v34 }
  0x91   : > { %425 = vmatmul.mubr.msk.bf16.vlgmr.msra.gmra.mxu0 %vm281_vm9, %v233_v36 }
 0x151   : > { %v318_v38 = vpop.f32.mrf.mxu0 }
 0x152   : > { %v319_v39 = vadd.f32 %v398_v37, %v318_v38 }
 0x153   : > { %v426_v40 = vpop.f32.mrf.mxu0 }
 0x154   : > { %vm325_vm10 = vcmp.gt.f32.partialorder %v319_v39, 0.0  ;;  %v327_v41 = vmul.f32 0.2, %v319_v39 }
 0x155   : > { %v321_v42 = vpop.f32.mrf.mxu0 }
 0x156   : > { %v329_v43 = vsel %vm325_vm10, %v319_v39, %v327_v41  ;;  %v322_v44 = vadd.f32 %v398_v37, %v321_v42 }
 0x157   : > { %331 = vst.msk [vmem:[%s170_s10] sm:$0xff] %vm222_vm5, %v329_v43  ;;  %v427_v45 = vpop.f32.mrf.mxu0 }
 0x158   : > { %vm326_vm11 = vcmp.gt.f32.partialorder %v322_v44, 0.0  ;;  %v328_v46 = vmul.f32 0.2, %v322_v44 }
 0x15a   : > { %v330_v47 = vsel %vm326_vm11, %v322_v44, %v328_v46 }
 0x15b   : > { %332 = vst.msk [vmem:[%s170_s10 + $0x8] sm:$0xff] %vm222_vm5, %v330_v47 }
 0x15c PF: > { %s13_s12 = sadd.s32 1, %s456_s12  }
 0x15d   : > { %p10_p4 = scmp.ge.s32.totalorder %s13_s12, 4  }
 0x15f   :  { %12 = sbr.rel (!%p10_p4) target bundleno = 1 (0x1), region = 62 }

// kernel: _lambda_.13
= control target key start
LH: loop header
LB: loop body
LE: loop exit
PB: predicated region body
PF: predicated region fallthrough
CT: control target
= control target key end

     0   :  { %s451_s12 = smov 0   ;;  %s493_s0 = inlined_call_operand.vmem [shape: bf16[2,1,12,16], index: 0, kind: input, shape index: {}]   ;;  %s494_s1 = inlined_call_operand.vmem [shape: bf16[80,8], index: 1, kind: input, shape index: {}]   ;;  %s495_s2 = inlined_call_operand.vmem [shape: f32[1,8], index: 2, kind: input, shape index: {}]   ;;  %s496_s3 = inlined_call_operand.vmem [shape: f32[2,8,8], index: 3, kind: output, shape index: {}]  }
   0x1 LB: > { %s358_s13 = sadd.s32 4294967295, %s423_s12   ;;  %p362_p0 = scmp.ge.s32.totalorder %s423_s12, 1  ;;  %s423_s12 = sphi %s451_s12, %s13_s12  }
   0x2   : > { %p137_p1 = scmp.lt.s32.totalorder %s423_s12, 3 }
   0x4   : > { %p138_p2 = pnand %p362_p0, %p137_p1 }
   0x5   : > { %p160_p3 = scmp.lt.s32.totalorder (!%p138_p2), %s358_s13, 1  ;;  %s427_s28 = smov (!%p138_p2), 16  }
   0x6   : > { %141 = sbr.rel (%p138_p2) target bundleno = 344 (0x158), region = 32  ;;  %s428_s29 = smov (!%p138_p2), 48  }
   0x7   : > { %s429_s30 = smov (!%p138_p2), 32   ;;  %s430_s4 = smov (!%p138_p2), 64  }
   0xb   : > { %v412_v0 = vld [vmem:[%s494_s1 + $0x20] sm:$0xff]   ;;  %v425_v1 = vmov 0.0   ;;  %s498_s13 = smov (!%p160_p3, %s358_s13), 1  ;;  %v413_v2 = vld [vmem:[%s494_s1 + $0x18] sm:$0xff]   ;;  %v414_v5 = vld [vmem:[%s494_s1 + $0x10] sm:$0xff]   ;;  %vm426_vm0 = vmmov 0  }
   0xc   : > { %383 = vmatprep.subr.bf16.mxu0 %v425_v1  ;;  %s376_s18 = sshll.u32 %s498_s13, 3  ;;  %393 = vmatprep.mubr.msk.bf16.mxu0 %vm426_vm0, %v425_v1  ;;  %v415_v9 = vld [vmem:[%s494_s1 + $0x8] sm:$0xff]   ;;  %v416_v15 = vld [vmem:[%s494_s1] sm:$0xff]   ;;  %vm197_vm1 = vcmask 130048   ;;  %vm201_vm2 = vcmask 261120   ;;  %vm204_vm3 = vcmask 392192  }
   0xd   : > { %384 = vmatpush3.bf16.msra.mxu0 %v412_v0  ;;  %s164_s21 = scalar_lea.vmem %s493_s0, %s376_s18  ;;  %vm207_vm4 = vcmask 523264   ;;  %vm257_vm5 = vcmask 654336   ;;  %v367_v26 = vld [vmem:[%s495_s2] ss:$0 sm:$0xff]  ;;  %s168_s9 = scalar_lea.vmem %s496_s3, %s376_s18  ;;  %vm303_vm7 = vcmask 64512  }
   0xe   : > { %385 = vmatprep.subr.bf16.mxu0 %v425_v1  ;;  %v170_v3 = vld [vmem:[%s164_s21] sm:$0xf]  ;;  %v171_v4 = vld [vmem:[%s164_s21 + $0x4] sm:$0x3] }
   0xf   : > { %v366_v6 = vcombine.low %v170_v3, %v171_v4 }
  0x11   : > { %386 = vmatpush3.bf16.msra.mxu0 %v413_v2  ;;  %v178_v7 = vshrl.u32 %v366_v6, 16  ;;  %v180_v8 = vshll.u32 %v366_v6, 16  ;;  %v186_v16 = vrot.slane %v366_v6, 1  ;;  %v194_v17 = vrot.slane %v366_v6, 2 }
  0x12   : > { %387 = vmatprep.subr.bf16.mxu0 %v425_v1 }
  0x13   : > { %v182_v10 = vrot.slane %v180_v8, 1  ;;  %v189_v11 = vrot.slane %v178_v7, 1  ;;  %v190_v12 = vrot.slane %v180_v8, 2 }
  0x15   : > { %388 = vmatpush3.bf16.msra.mxu0 %v414_v5  ;;  %v183_v13 = vor.u32 %v182_v10, %v178_v7  ;;  %v191_v14 = vor.u32 %v190_v12, %v189_v11 }
  0x16   : > { %389 = vmatprep.subr.bf16.mxu0 %v425_v1 }
  0x17   : > { %184 = vrot.lane.b32.xlu0 %v183_v13, %s427_s28  ;;  %192 = vrot.lane.b32.xlu1 %v191_v14, %s428_s29 }
  0x19   : > { %390 = vmatpush3.bf16.msra.mxu0 %v415_v9 }
  0x1a   : > { %391 = vmatprep.subr.bf16.mxu0 %v425_v1 }
  0x1b   : > { %187 = vrot.lane.b32.xlu0 %v186_v16, %s429_s30  ;;  %195 = vrot.lane.b32.xlu1 %v194_v17, %s430_s4 }
  0x1d   : > { %392 = vmatpush3.bf16.msra.mxu0 %v416_v15 }
  0x89   : > { %v185_v18 = vpop.permute.xlu0 %184  ;;  %v193_v19 = vpop.permute.xlu1 %192 }
  0x8a   : > { %v200_v20 = vsel %vm197_vm1, %v170_v3, %v185_v18 }
  0x8d   : > { %v188_v21 = vpop.permute.xlu0 %187  ;;  %v196_v22 = vpop.permute.xlu1 %195 }
  0x8e   : > { %v203_v23 = vsel %vm201_vm2, %v200_v20, %v188_v21 }
  0x8f   : > { %v206_v24 = vsel %vm204_vm3, %v203_v23, %v193_v19 }
  0x90   : > { %v209_v25 = vsel %vm207_vm4, %v206_v24, %v196_v22 }
  0x91   : > { %394 = vmatmul.mubr.msk.bf16.vlgmr.msra.gmra.mxu0 %vm257_vm5, %v209_v25 }
 0x151   : > { %v294_v27 = vpop.f32.mrf.mxu0 }
 0x152   : > { %v295_v28 = vadd.f32 %v367_v26, %v294_v27 }
 0x153   : > { %v395_v29 = vpop.f32.mrf.mxu0 }
 0x154   : > { %vm300_vm6 = vcmp.gt.f32.partialorder %v295_v28, 0.0  ;;  %v301_v30 = vmul.f32 0.2, %v295_v28 }
 0x155   : > { %v297_v31 = vpop.f32.mrf.mxu0 }
 0x156   : > { %v302_v32 = vsel %vm300_vm6, %v295_v28, %v301_v30 }
 0x157   : > { %304 = vst.msk [vmem:[%s168_s9] sm:$0xff] %vm303_vm7, %v302_v32  ;;  %v396_v33 = vpop.f32.mrf.mxu0 }
 0x158 PF: > { %s13_s12 = sadd.s32 1, %s423_s12  }
 0x159   : > { %p10_p4 = scmp.ge.s32.totalorder %s13_s12, 4  }
 0x15b   :  { %12 = sbr.rel (!%p10_p4) target bundleno = 1 (0x1), region = 62 }

// kernel: _lambda_.14
= control target key start
LH: loop header
LB: loop body
LE: loop exit
PB: predicated region body
PF: predicated region fallthrough
CT: control target
= control target key end

     0   :  { %s433_s12 = smov 0   ;;  %s466_s0 = inlined_call_operand.vmem [shape: bf16[2,2,6,8], index: 0, kind: input, shape index: {}]   ;;  %s467_s1 = inlined_call_operand.vmem [shape: bf16[40,8], index: 1, kind: input, shape index: {}]   ;;  %s468_s2 = inlined_call_operand.vmem [shape: f32[1,8], index: 2, kind: input, shape index: {}]   ;;  %s469_s3 = inlined_call_operand.vmem [shape: f32[2,4,8], index: 3, kind: output, shape index: {}]  }
   0x1 LB: > { %s347_s13 = sadd.s32 4294967295, %s405_s12   ;;  %p351_p0 = scmp.ge.s32.totalorder %s405_s12, 1  ;;  %s405_s12 = sphi %s433_s12, %s13_s12  }
   0x2   : > { %p137_p1 = scmp.lt.s32.totalorder %s405_s12, 3 }
   0x4   : > { %p138_p2 = pnand %p351_p0, %p137_p1 }
   0x5   : > { %p160_p3 = scmp.lt.s32.totalorder (!%p138_p2), %s347_s13, 1  ;;  %s409_s22 = smov (!%p138_p2), 8  }
   0x6   : > { %141 = sbr.rel (%p138_p2) target bundleno = 340 (0x154), region = 32  ;;  %s410_s25 = smov (!%p138_p2), 24  }
   0x7   : > { %s411_s26 = smov (!%p138_p2), 16   ;;  %s412_s27 = smov (!%p138_p2), 32  }
   0xb   : > { %vm245_vm0 = vcmask 1043456   ;;  %v407_v0 = vmov 0.0   ;;  %v396_v1 = vld [vmem:[%s467_s1 + $0x10] ss:$0 sps:$4 sm:$0xff]   ;;  %s471_s13 = smov (!%p160_p3, %s347_s13), 1  ;;  %v397_v3 = vld [vmem:[%s467_s1 + $0x8] sm:$0xff]  }
   0xc   : > { %370 = vmatprep.subr.bf16.mxu0 %v407_v0  ;;  %v247_v2 = vsel %vm245_vm0, %v396_v1, 0  ;;  %s365_s16 = sshll.u32 %s471_s13, 3  ;;  %vm408_vm1 = vmmov 0   ;;  %v398_v9 = vld [vmem:[%s467_s1] sm:$0xff]   ;;  %vm202_vm2 = vcmask 64512   ;;  %vm206_vm3 = vcmask 130048  }
   0xd   : > { %371 = vmatpush3.bf16.msra.mxu0 %v247_v2  ;;  %s164_s21 = scalar_lea.vmem %s466_s0, %s365_s16  ;;  %376 = vmatprep.mubr.msk.bf16.mxu0 %vm408_vm1, %v407_v0  ;;  %vm209_vm4 = vcmask 195584   ;;  %vm212_vm5 = vcmask 261120   ;;  %vm242_vm6 = vcmask 326656   ;;  %v358_v25 = vld [vmem:[%s468_s2] ss:$0 sm:$0xff]  ;;  %s354_s30 = sshll.u32 %s471_s13, 2 }
   0xe   : > { %372 = vmatprep.subr.bf16.mxu0 %v407_v0  ;;  %v394_v4 = vld [vmem:[%s164_s21 + $0x4] ss:$0 sps:$4 sm:$0x77]   ;;  %v170_v5 = vld [vmem:[%s164_s21] sm:$0x7]  ;;  %s168_s6 = scalar_lea.vmem %s469_s3, %s354_s30  ;;  %vm292_vm8 = vcmask 60416  }
   0xf   : > { %176 = vrot.lane.b32.xlu0 %v394_v4, %s409_s22  ;;  %v357_v6 = vcombine.low %v170_v5, %v170_v5  ;;  %v191_v7 = vshrl.u32 %v394_v4, 16  ;;  %v193_v8 = vshll.u32 %v394_v4, 16 }
  0x11   : > { %373 = vmatpush3.bf16.msra.mxu0 %v397_v3  ;;  %v195_v10 = vrot.slane %v193_v8, 1  ;;  %v182_v11 = vshrl.u32 %v357_v6, 16  ;;  %v184_v12 = vshll.u32 %v357_v6, 16  ;;  %v199_v16 = vrot.slane %v357_v6, 1 }
  0x12   : > { %374 = vmatprep.subr.bf16.mxu0 %v407_v0 }
  0x13   : > { %v196_v13 = vor.u32 %v195_v10, %v191_v7  ;;  %v186_v14 = vrot.slane %v184_v12, 1 }
  0x15   : > { %375 = vmatpush3.bf16.msra.mxu0 %v398_v9  ;;  %197 = vrot.lane.b32.xlu1 %v196_v13, %s410_s25  ;;  %v187_v15 = vor.u32 %v186_v14, %v182_v11 }
  0x17   : > { %188 = vrot.lane.b32.xlu0 %v187_v15, %s411_s26 }
  0x19   : > { %200 = vrot.lane.b32.xlu1 %v199_v16, %s412_s27 }
  0x81   : > { %v177_v17 = vpop.permute.xlu0 %176 }
  0x82   : > { %v205_v19 = vsel %vm202_vm2, %v170_v5, %v177_v17 }
  0x87   : > { %v198_v18 = vpop.permute.xlu1 %197 }
  0x89   : > { %v189_v20 = vpop.permute.xlu0 %188 }
  0x8a   : > { %v208_v21 = vsel %vm206_vm3, %v205_v19, %v189_v20 }
  0x8b   : > { %v201_v22 = vpop.permute.xlu1 %200  ;;  %v211_v23 = vsel %vm209_vm4, %v208_v21, %v198_v18 }
  0x8c   : > { %v214_v24 = vsel %vm212_vm5, %v211_v23, %v201_v22 }
  0x8d   : > { %377 = vmatmul.mubr.msk.bf16.vlgmr.msra.gmra.mxu0 %vm242_vm6, %v214_v24 }
 0x14d   : > { %v283_v26 = vpop.f32.mrf.mxu0 }
 0x14e   : > { %v284_v27 = vadd.f32 %v358_v25, %v283_v26 }
 0x14f   : > { %v378_v28 = vpop.f32.mrf.mxu0 }
 0x150   : > { %vm289_vm7 = vcmp.gt.f32.partialorder %v284_v27, 0.0  ;;  %v290_v29 = vmul.f32 0.2, %v284_v27 }
 0x151   : > { %v286_v30 = vpop.f32.mrf.mxu0 }
 0x152   : > { %v291_v31 = vsel %vm289_vm7, %v284_v27, %v290_v29 }
 0x153   : > { %293 = vst.msk [vmem:[%s168_s6] sm:$0xf] %vm292_vm8, %v291_v31  ;;  %v379_v32 = vpop.f32.mrf.mxu0 }
 0x154 PF: > { %s13_s12 = sadd.s32 1, %s405_s12  }
 0x155   : > { %p10_p4 = scmp.ge.s32.totalorder %s13_s12, 4  }
 0x157   :  { %12 = sbr.rel (!%p10_p4) target bundleno = 1 (0x1), region = 63 }

// kernel: _lambda_.15
= control target key start
LH: loop header
LB: loop body
LE: loop exit
PB: predicated region body
PF: predicated region fallthrough
CT: control target
= control target key end

     0   :  { %s417_s12 = smov 0   ;;  %s453_s0 = inlined_call_operand.vmem [shape: bf16[2,1,8,8], index: 0, kind: input, shape index: {}]   ;;  %s454_s1 = inlined_call_operand.vmem [shape: bf16[40,4], index: 1, kind: input, shape index: {}]   ;;  %s455_s2 = inlined_call_operand.vmem [shape: f32[1,4], index: 2, kind: input, shape index: {}]   ;;  %s456_s3 = inlined_call_operand.vmem [shape: f32[2,4,4], index: 3, kind: output, shape index: {}]  }
   0x1 LB: > { %s336_s13 = sadd.s32 4294967295, %s389_s12   ;;  %p340_p0 = scmp.ge.s32.totalorder %s389_s12, 1  ;;  %s389_s12 = sphi %s417_s12, %s13_s12  }
   0x2   : > { %p136_p1 = scmp.lt.s32.totalorder %s389_s12, 3 }
   0x4   : > { %p137_p2 = pnand %p340_p0, %p136_p1 }
   0x5   : > { %p158_p3 = scmp.lt.s32.totalorder (!%p137_p2), %s336_s13, 1  ;;  %s393_s24 = smov (!%p137_p2), 8  }
   0x6   : > { %140 = sbr.rel (%p137_p2) target bundleno = 344 (0x158), region = 32  ;;  %s394_s25 = smov (!%p137_p2), 24  }
   0x7   : > { %s395_s26 = smov (!%p137_p2), 16   ;;  %s396_s27 = smov (!%p137_p2), 32  }
   0xb   : > { %vm234_vm0 = vcmask 1043456   ;;  %v391_v0 = vmov 0.0   ;;  %v380_v1 = vld [vmem:[%s454_s1 + $0x10] ss:$0 sps:$4 sm:$0xff]   ;;  %s458_s13 = smov (!%p158_p3, %s336_s13), 1  ;;  %v381_v3 = vld [vmem:[%s454_s1 + $0x8] sm:$0xff]  }
   0xc   : > { %355 = vmatprep.subr.bf16.mxu0 %v391_v0  ;;  %v236_v2 = vsel %vm234_vm0, %v380_v1, 0  ;;  %s341_s16 = sshll.u32 %s458_s13, 2  ;;  %v382_v6 = vld [vmem:[%s454_s1] sm:$0xff]   ;;  %vm392_vm1 = vmmov 0   ;;  %vm191_vm2 = vcmask 64512   ;;  %vm195_vm3 = vcmask 130048  }
   0xd   : > { %356 = vmatpush3.bf16.msra.mxu0 %v236_v2  ;;  %s161_s21 = scalar_lea.vmem %s453_s0, %s341_s16  ;;  %361 = vmatprep.mubr.msk.bf16.mxu0 %vm392_vm1, %v391_v0  ;;  %vm198_vm4 = vcmask 195584   ;;  %vm201_vm5 = vcmask 261120   ;;  %vm231_vm6 = vcmask 326656   ;;  %v344_v24 = vld [vmem:[%s455_s2] ss:$0 sm:$0xff]  ;;  %s165_s5 = scalar_lea.vmem %s456_s3, %s341_s16  ;;  %vm281_vm8 = vcmask 27648  }
   0xe   : > { %357 = vmatprep.subr.bf16.mxu0 %v391_v0  ;;  %v167_v4 = vld [vmem:[%s161_s21] sm:$0xf] }
   0xf   : > { %v343_v5 = vcombine.low %v167_v4, %v167_v4 }
  0x11   : > { %358 = vmatpush3.bf16.msra.mxu0 %v381_v3  ;;  %v172_v7 = vshrl.u32 %v343_v5, 16  ;;  %v174_v8 = vshll.u32 %v343_v5, 16  ;;  %v180_v14 = vrot.slane %v343_v5, 1  ;;  %v188_v15 = vrot.slane %v343_v5, 2 }
  0x12   : > { %359 = vmatprep.subr.bf16.mxu0 %v391_v0 }
  0x13   : > { %v176_v9 = vrot.slane %v174_v8, 1  ;;  %v183_v10 = vrot.slane %v172_v7, 1  ;;  %v184_v11 = vrot.slane %v174_v8, 2 }
  0x15   : > { %360 = vmatpush3.bf16.msra.mxu0 %v382_v6  ;;  %v177_v12 = vor.u32 %v176_v9, %v172_v7  ;;  %v185_v13 = vor.u32 %v184_v11, %v183_v10 }
  0x17   : > { %178 = vrot.lane.b32.xlu0 %v177_v12, %s393_s24  ;;  %186 = vrot.lane.b32.xlu1 %v185_v13, %s394_s25 }
  0x1b   : > { %181 = vrot.lane.b32.xlu0 %v180_v14, %s395_s26  ;;  %189 = vrot.lane.b32.xlu1 %v188_v15, %s396_s27 }
  0x89   : > { %v179_v16 = vpop.permute.xlu0 %178  ;;  %v187_v17 = vpop.permute.xlu1 %186 }
  0x8a   : > { %v194_v18 = vsel %vm191_vm2, %v167_v4, %v179_v16 }
  0x8d   : > { %v182_v19 = vpop.permute.xlu0 %181  ;;  %v190_v20 = vpop.permute.xlu1 %189 }
  0x8e   : > { %v197_v21 = vsel %vm195_vm3, %v194_v18, %v182_v19 }
  0x8f   : > { %v200_v22 = vsel %vm198_vm4, %v197_v21, %v187_v17 }
  0x90   : > { %v203_v23 = vsel %vm201_vm5, %v200_v22, %v190_v20 }
  0x91   : > { %362 = vmatmul.mubr.msk.bf16.vlgmr.msra.gmra.mxu0 %vm231_vm6, %v203_v23 }
 0x151   : > { %v272_v25 = vpop.f32.mrf.mxu0 }
 0x152   : > { %v273_v26 = vadd.f32 %v344_v24, %v272_v25 }
 0x153   : > { %v363_v27 = vpop.f32.mrf.mxu0 }
 0x154   : > { %vm278_vm7 = vcmp.gt.f32.partialorder %v273_v26, 0.0  ;;  %v279_v28 = vmul.f32 0.2, %v273_v26 }
 0x155   : > { %v275_v29 = vpop.f32.mrf.mxu0 }
 0x156   : > { %v280_v30 = vsel %vm278_vm7, %v273_v26, %v279_v28 }
 0x157   : > { %282 = vst.msk [vmem:[%s165_s5] sm:$0xf] %vm281_vm8, %v280_v30  ;;  %v364_v31 = vpop.f32.mrf.mxu0 }
 0x158 PF: > { %s13_s12 = sadd.s32 1, %s389_s12  }
 0x159   : > { %p10_p4 = scmp.ge.s32.totalorder %s13_s12, 4  }
 0x15b   :  { %12 = sbr.rel (!%p10_p4) target bundleno = 1 (0x1), region = 62 }

// kernel: _lambda_.16
= control target key start
LH: loop header
LB: loop body
LE: loop exit
PB: predicated region body
PF: predicated region fallthrough
CT: control target
= control target key end

     0   :  { %s501_s12 = smov 0   ;;  %s536_s0 = inlined_call_operand.vmem [shape: bf16[2,1,8,4], index: 0, kind: input, shape index: {}]   ;;  %s537_s1 = inlined_call_operand.vmem [shape: bf16[20,8], index: 1, kind: input, shape index: {}]   ;;  %s538_s2 = inlined_call_operand.vmem [shape: f32[1,8], index: 2, kind: input, shape index: {}]   ;;  %s539_s3 = inlined_call_operand.vmem [shape: f32[2,4,8], index: 3, kind: output, shape index: {}]  }
   0x1 LB: > { %s415_s13 = sadd.s32 4294967295, %s473_s12   ;;  %p419_p0 = scmp.ge.s32.totalorder %s473_s12, 1  ;;  %s473_s12 = sphi %s501_s12, %s13_s12  }
   0x2   : > { %p136_p1 = scmp.lt.s32.totalorder %s473_s12, 3 }
   0x4   : > { %p137_p2 = pnand %p419_p0, %p136_p1 }
   0x5   : > { %p158_p3 = scmp.lt.s32.totalorder (!%p137_p2), %s415_s13, 1  ;;  %s477_s22 = smov (!%p137_p2), 4  }
   0x6   : > { %140 = sbr.rel (%p137_p2) target bundleno = 538 (0x21a), region = 32  ;;  %s478_s23 = smov (!%p137_p2), 12  }
   0x7   : > { %s479_s24 = smov (!%p137_p2), 8   ;;  %s480_s25 = smov (!%p137_p2), 16  }
   0xb   : > { %v475_v0 = vmov 0.0   ;;  %v465_v1 = vld [vmem:[%s537_s1 + $0x8] ss:$0 sps:$4 sm:$0x33]   ;;  %vm226_vm0 = vcmask 1041408   ;;  %s541_s13 = smov (!%p158_p3, %s415_s13), 1  ;;  %v270_v23 = vlaneseq }
   0xc   : > { %437 = vmatprep.subr.bf16.mxu0 %v475_v0  ;;  %445 = vmatprep.subr.mxu1 %v475_v0  ;;  %v228_v2 = vsel %vm226_vm0, %v465_v1, 0  ;;  %s420_s16 = sshll.u32 %s541_s13, 2  ;;  %v466_v3 = vld [vmem:[%s537_s1] sm:$0xff]   ;;  %vm476_vm1 = vmmov 0   ;;  %vm191_vm2 = vcmask 31744   ;;  %vm195_vm3 = vcmask 64512  }
   0xd   : > { %438 = vmatpush3.bf16.msra.mxu0 %v228_v2  ;;  %s161_s21 = scalar_lea.vmem %s536_s0, %s420_s16  ;;  %441 = vmatprep.mubr.msk.bf16.mxu0 %vm476_vm1, %v475_v0  ;;  %vm198_vm4 = vcmask 97280   ;;  %vm201_vm5 = vcmask 130048   ;;  %vm223_vm6 = vcmask 162816   ;;  %v271_v24 = vshrl.u32 %v270_v23, 7  ;;  %v423_v29 = vld [vmem:[%s538_s2] ss:$0 sm:$0xff]  ;;  %s165_s30 = scalar_lea.vmem %s539_s3, %s420_s16 }
   0xe   : > { %439 = vmatprep.subr.bf16.mxu0 %v475_v0  ;;  %v167_v4 = vld [vmem:[%s161_s21] sm:$0xf]  ;;  %447 = vmatprep.mubr.msk.f32.mxu1 %vm476_vm1, %v475_v0  ;;  %v273_v25 = vand.u32 127, %v270_v23  ;;  %vm283_vm8 = vcmask 1043456   ;;  %vm360_vm10 = vcmask 60416  }
   0xf   : > { %v422_v5 = vcombine.low %v167_v4, %v167_v4 }
  0x10   : > { %v274_v26 = vsub.s32 %v271_v24, %v273_v25 }
  0x11   : > { %440 = vmatpush3.bf16.msra.mxu0 %v466_v3  ;;  %v172_v6 = vshrl.u32 %v422_v5, 16  ;;  %v174_v7 = vshll.u32 %v422_v5, 16  ;;  %v180_v13 = vrot.slane %v422_v5, 1  ;;  %v188_v14 = vrot.slane %v422_v5, 2 }
  0x12   : > { %v276_v27 = vsub.s32 0, %v274_v26 }
  0x13   : > { %v176_v8 = vrot.slane %v174_v7, 1  ;;  %v183_v9 = vrot.slane %v172_v6, 1  ;;  %v184_v10 = vrot.slane %v174_v7, 2 }
  0x14   : > { %v427_v28 = vmin.u32 %v276_v27, %v274_v26 }
  0x15   : > { %v177_v11 = vor.u32 %v176_v8, %v172_v6  ;;  %v185_v12 = vor.u32 %v184_v10, %v183_v9 }
  0x16   : > { %vm278_vm7 = vcmp.le.s32.totalorder %v427_v28, 1 }
  0x17   : > { %178 = vrot.lane.b32.xlu0 %v177_v11, %s477_s22  ;;  %186 = vrot.lane.b32.xlu1 %v185_v12, %s478_s23  ;;  %v279_v32 = vsel %vm278_vm7, 0.33333334, %v475_v0 }
  0x1b   : > { %181 = vrot.lane.b32.xlu0 %v180_v13, %s479_s24  ;;  %189 = vrot.lane.b32.xlu1 %v188_v14, %s480_s25 }
  0x89   : > { %v179_v15 = vpop.permute.xlu0 %178  ;;  %v187_v16 = vpop.permute.xlu1 %186 }
  0x8a   : > { %v194_v17 = vsel %vm191_vm2, %v167_v4, %v179_v15 }
  0x8d   : > { %v182_v18 = vpop.permute.xlu0 %181  ;;  %v190_v19 = vpop.permute.xlu1 %189 }
  0x8e   : > { %v197_v20 = vsel %vm195_vm3, %v194_v17, %v182_v18 }
  0x8f   : > { %v200_v21 = vsel %vm198_vm4, %v197_v20, %v187_v16 }
  0x90   : > { %v203_v22 = vsel %vm201_vm5, %v200_v21, %v190_v19 }
  0x91   : > { %442 = vmatmul.mubr.msk.bf16.vlgmr.msra.gmra.mxu0 %vm223_vm6, %v203_v22 }
 0x151   : > { %v264_v30 = vpop.f32.mrf.mxu0 }
 0x152   : > { %v265_v31 = vadd.f32 %v423_v29, %v264_v30 }
 0x153   : > { %v443_v33 = vpop.f32.mrf.mxu0 }
 0x154   : > { %446 = vmatpush3.msk.msra.mxu1 %vm283_vm8, %v265_v31 }
 0x155   : > { %v267_v34 = vpop.f32.mrf.mxu0  ;;  %448 = vmatmul.mubr.msk.f32.vlgmr.msra.gmra.mxu1 %vm191_vm2, %v279_v32 }
 0x157   : > { %v444_v35 = vpop.f32.mrf.mxu0 }
 0x215   : > { %v353_v36 = vpop.f32.mrf.mxu1 }
 0x216   : > { %vm357_vm9 = vcmp.gt.f32.partialorder %v353_v36, 0.0  ;;  %v358_v37 = vmul.f32 0.2, %v353_v36 }
 0x217   : > { %v449_v38 = vpop.f32.mrf.mxu1 }
 0x218   : > { %v359_v39 = vsel %vm357_vm9, %v353_v36, %v358_v37 }
 0x219   : > { %361 = vst.msk [vmem:[%s165_s30] sm:$0xf] %vm360_vm10, %v359_v39 }
 0x21a PF: > { %s13_s12 = sadd.s32 1, %s473_s12  }
 0x21b   : > { %p10_p4 = scmp.ge.s32.totalorder %s13_s12, 4  }
 0x21d   :  { %12 = sbr.rel (!%p10_p4) target bundleno = 1 (0x1), region = 62 }

// kernel: _lambda_.18
= control target key start
LH: loop header
LB: loop body
LE: loop exit
PB: predicated region body
PF: predicated region fallthrough
CT: control target
= control target key end

     0   :  { %s516_s12 = smov 0   ;;  %s556_s0 = inlined_call_operand.vmem [shape: bf16[2,1,12,8], index: 0, kind: input, shape index: {}]   ;;  %s557_s1 = inlined_call_operand.vmem [shape: bf16[40,16], index: 1, kind: input, shape index: {}]   ;;  %s558_s2 = inlined_call_operand.vmem [shape: f32[1,16], index: 2, kind: input, shape index: {}]   ;;  %s559_s3 = inlined_call_operand.vmem [shape: f32[2,8,16], index: 3, kind: output, shape index: {}]  }
   0x1 LB: > { %s424_s13 = sadd.s32 4294967295, %s488_s12   ;;  %p428_p0 = scmp.ge.s32.totalorder %s488_s12, 1  ;;  %s488_s12 = sphi %s516_s12, %s13_s12  }
   0x2   : > { %p137_p1 = scmp.lt.s32.totalorder %s488_s12, 3 }
   0x4   : > { %p138_p2 = pnand %p428_p0, %p137_p1 }
   0x5   : > { %p160_p3 = scmp.lt.s32.totalorder (!%p138_p2), %s424_s13, 1  ;;  %s492_s24 = smov (!%p138_p2), 8  }
   0x6   : > { %141 = sbr.rel (%p138_p2) target bundleno = 538 (0x21a), region = 32  ;;  %s493_s25 = smov (!%p138_p2), 24  }
   0x7   : > { %s494_s26 = smov (!%p138_p2), 16   ;;  %s495_s27 = smov (!%p138_p2), 32  }
   0xb   : > { %vm240_vm0 = vcmask 1043456   ;;  %v490_v0 = vmov 0.0   ;;  %v479_v1 = vld [vmem:[%s557_s1 + $0x10] ss:$0 sps:$4 sm:$0xff]   ;;  %s561_s13 = smov (!%p160_p3, %s424_s13), 1  ;;  %v480_v3 = vld [vmem:[%s557_s1 + $0x8] sm:$0xff]   ;;  %v284_v25 = vlaneseq }
   0xc   : > { %449 = vmatprep.subr.bf16.mxu0 %v490_v0  ;;  %459 = vmatprep.subr.mxu1 %v490_v0  ;;  %v242_v2 = vsel %vm240_vm0, %v479_v1, 0  ;;  %s442_s16 = sshll.u32 %s561_s13, 3  ;;  %v481_v7 = vld [vmem:[%s557_s1] sm:$0xff]   ;;  %vm491_vm1 = vmmov 0   ;;  %vm197_vm2 = vcmask 64512   ;;  %vm201_vm3 = vcmask 130048  }
   0xd   : > { %450 = vmatpush3.bf16.msra.mxu0 %v242_v2  ;;  %s164_s21 = scalar_lea.vmem %s556_s0, %s442_s16  ;;  %455 = vmatprep.mubr.msk.bf16.mxu0 %vm491_vm1, %v490_v0  ;;  %vm204_vm4 = vcmask 195584   ;;  %vm207_vm5 = vcmask 261120   ;;  %vm237_vm6 = vcmask 326656   ;;  %v285_v26 = vshrl.u32 %v284_v25, 7  ;;  %v433_v31 = vld [vmem:[%s558_s2] ss:$0 sm:$0xff]  ;;  %s168_s5 = scalar_lea.vmem %s559_s3, %s442_s16 }
   0xe   : > { %451 = vmatprep.subr.bf16.mxu0 %v490_v0  ;;  %v170_v4 = vld [vmem:[%s164_s21] sm:$0xf]  ;;  %v171_v5 = vld [vmem:[%s164_s21 + $0x4] sm:$0x3]  ;;  %461 = vmatprep.mubr.msk.f32.mxu1 %vm491_vm1, %v490_v0  ;;  %v287_v27 = vand.u32 127, %v284_v25 }
   0xf   : > { %v432_v6 = vcombine.low %v170_v4, %v171_v5 }
  0x10   : > { %v288_v28 = vsub.s32 %v285_v26, %v287_v27 }
  0x11   : > { %452 = vmatpush3.bf16.msra.mxu0 %v480_v3  ;;  %v178_v8 = vshrl.u32 %v432_v6, 16  ;;  %v180_v9 = vshll.u32 %v432_v6, 16  ;;  %v186_v15 = vrot.slane %v432_v6, 1  ;;  %v194_v16 = vrot.slane %v432_v6, 2 }
  0x12   : > { %453 = vmatprep.subr.bf16.mxu0 %v490_v0  ;;  %v290_v29 = vsub.s32 0, %v288_v28 }
  0x13   : > { %v182_v10 = vrot.slane %v180_v9, 1  ;;  %v189_v11 = vrot.slane %v178_v8, 1  ;;  %v190_v12 = vrot.slane %v180_v9, 2 }
  0x14   : > { %v438_v30 = vmin.u32 %v290_v29, %v288_v28 }
  0x15   : > { %454 = vmatpush3.bf16.msra.mxu0 %v481_v7  ;;  %v183_v13 = vor.u32 %v182_v10, %v178_v8  ;;  %v191_v14 = vor.u32 %v190_v12, %v189_v11 }
  0x16   : > { %vm292_vm7 = vcmp.le.s32.totalorder %v438_v30, 1 }
  0x17   : > { %184 = vrot.lane.b32.xlu0 %v183_v13, %s492_s24  ;;  %192 = vrot.lane.b32.xlu1 %v191_v14, %s493_s25  ;;  %v293_v34 = vsel %vm292_vm7, 0.33333334, %v490_v0 }
  0x1b   : > { %187 = vrot.lane.b32.xlu0 %v186_v15, %s494_s26  ;;  %195 = vrot.lane.b32.xlu1 %v194_v16, %s495_s27 }
  0x89   : > { %v185_v17 = vpop.permute.xlu0 %184  ;;  %v193_v18 = vpop.permute.xlu1 %192 }
  0x8a   : > { %v200_v19 = vsel %vm197_vm2, %v170_v4, %v185_v17 }
  0x8d   : > { %v188_v20 = vpop.permute.xlu0 %187  ;;  %v196_v21 = vpop.permute.xlu1 %195 }
  0x8e   : > { %v203_v22 = vsel %vm201_vm3, %v200_v19, %v188_v20 }
  0x8f   : > { %v206_v23 = vsel %vm204_vm4, %v203_v22, %v193_v18 }
  0x90   : > { %v209_v24 = vsel %vm207_vm5, %v206_v23, %v196_v21 }
  0x91   : > { %456 = vmatmul.mubr.msk.bf16.vlgmr.msra.gmra.mxu0 %vm237_vm6, %v209_v24 }
 0x151   : > { %v278_v32 = vpop.f32.mrf.mxu0 }
 0x152   : > { %v279_v33 = vadd.f32 %v433_v31, %v278_v32 }
 0x153   : > { %v457_v35 = vpop.f32.mrf.mxu0 }
 0x154   : > { %460 = vmatpush3.msra.mxu1 %v279_v33 }
 0x155   : > { %v281_v36 = vpop.f32.mrf.mxu0  ;;  %462 = vmatmul.mubr.msk.f32.vlgmr.msra.gmra.mxu1 %vm197_vm2, %v293_v34 }
 0x157   : > { %v458_v37 = vpop.f32.mrf.mxu0 }
 0x215   : > { %v363_v38 = vpop.f32.mrf.mxu1 }
 0x216   : > { %vm367_vm8 = vcmp.gt.f32.partialorder %v363_v38, 0.0  ;;  %v368_v39 = vmul.f32 0.2, %v363_v38 }
 0x217   : > { %v463_v40 = vpop.f32.mrf.mxu1 }
 0x218   : > { %v369_v41 = vsel %vm367_vm8, %v363_v38, %v368_v39 }
 0x219   : > { %370 = vst.msk [vmem:[%s168_s5] sm:$0xff] %vm201_vm3, %v369_v41 }
 0x21a PF: > { %s13_s12 = sadd.s32 1, %s488_s12  }
 0x21b   : > { %p10_p4 = scmp.ge.s32.totalorder %s13_s12, 4  }
 0x21d   :  { %12 = sbr.rel (!%p10_p4) target bundleno = 1 (0x1), region = 62 }

// kernel: _lambda_.17
= control target key start
LH: loop header
LB: loop body
LE: loop exit
PB: predicated region body
PF: predicated region fallthrough
CT: control target
= control target key end

     0   :  { %s516_s12 = smov 0   ;;  %s555_s0 = inlined_call_operand.vmem [shape: bf16[2,1,12,8], index: 0, kind: input, shape index: {}]   ;;  %s556_s1 = inlined_call_operand.vmem [shape: bf16[40,8], index: 1, kind: input, shape index: {}]   ;;  %s557_s2 = inlined_call_operand.vmem [shape: f32[1,8], index: 2, kind: input, shape index: {}]   ;;  %s558_s3 = inlined_call_operand.vmem [shape: f32[2,8,8], index: 3, kind: output, shape index: {}]  }
   0x1 LB: > { %s424_s13 = sadd.s32 4294967295, %s488_s12   ;;  %p428_p0 = scmp.ge.s32.totalorder %s488_s12, 1  ;;  %s488_s12 = sphi %s516_s12, %s13_s12  }
   0x2   : > { %p137_p1 = scmp.lt.s32.totalorder %s488_s12, 3 }
   0x4   : > { %p138_p2 = pnand %p428_p0, %p137_p1 }
   0x5   : > { %p160_p3 = scmp.lt.s32.totalorder (!%p138_p2), %s424_s13, 1  ;;  %s492_s24 = smov (!%p138_p2), 8  }
   0x6   : > { %141 = sbr.rel (%p138_p2) target bundleno = 538 (0x21a), region = 32  ;;  %s493_s25 = smov (!%p138_p2), 24  }
   0x7   : > { %s494_s26 = smov (!%p138_p2), 16   ;;  %s495_s27 = smov (!%p138_p2), 32  }
   0xb   : > { %vm240_vm0 = vcmask 1043456   ;;  %v490_v0 = vmov 0.0   ;;  %v479_v1 = vld [vmem:[%s556_s1 + $0x10] ss:$0 sps:$4 sm:$0xff]   ;;  %s560_s13 = smov (!%p160_p3, %s424_s13), 1  ;;  %v480_v3 = vld [vmem:[%s556_s1 + $0x8] sm:$0xff]   ;;  %v284_v25 = vlaneseq }
   0xc   : > { %449 = vmatprep.subr.bf16.mxu0 %v490_v0  ;;  %459 = vmatprep.subr.mxu1 %v490_v0  ;;  %v242_v2 = vsel %vm240_vm0, %v479_v1, 0  ;;  %s442_s16 = sshll.u32 %s560_s13, 3  ;;  %v481_v7 = vld [vmem:[%s556_s1] sm:$0xff]   ;;  %vm491_vm1 = vmmov 0   ;;  %vm197_vm2 = vcmask 64512   ;;  %vm201_vm3 = vcmask 130048  }
   0xd   : > { %450 = vmatpush3.bf16.msra.mxu0 %v242_v2  ;;  %s164_s21 = scalar_lea.vmem %s555_s0, %s442_s16  ;;  %455 = vmatprep.mubr.msk.bf16.mxu0 %vm491_vm1, %v490_v0  ;;  %vm204_vm4 = vcmask 195584   ;;  %vm207_vm5 = vcmask 261120   ;;  %vm237_vm6 = vcmask 326656   ;;  %v285_v26 = vshrl.u32 %v284_v25, 7  ;;  %v433_v31 = vld [vmem:[%s557_s2] ss:$0 sm:$0xff]  ;;  %s168_s5 = scalar_lea.vmem %s558_s3, %s442_s16 }
   0xe   : > { %451 = vmatprep.subr.bf16.mxu0 %v490_v0  ;;  %v170_v4 = vld [vmem:[%s164_s21] sm:$0xf]  ;;  %v171_v5 = vld [vmem:[%s164_s21 + $0x4] sm:$0x3]  ;;  %461 = vmatprep.mubr.msk.f32.mxu1 %vm491_vm1, %v490_v0  ;;  %v287_v27 = vand.u32 127, %v284_v25 }
   0xf   : > { %v432_v6 = vcombine.low %v170_v4, %v171_v5 }
  0x10   : > { %v288_v28 = vsub.s32 %v285_v26, %v287_v27 }
  0x11   : > { %452 = vmatpush3.bf16.msra.mxu0 %v480_v3  ;;  %v178_v8 = vshrl.u32 %v432_v6, 16  ;;  %v180_v9 = vshll.u32 %v432_v6, 16  ;;  %v186_v15 = vrot.slane %v432_v6, 1  ;;  %v194_v16 = vrot.slane %v432_v6, 2 }
  0x12   : > { %453 = vmatprep.subr.bf16.mxu0 %v490_v0  ;;  %v290_v29 = vsub.s32 0, %v288_v28 }
  0x13   : > { %v182_v10 = vrot.slane %v180_v9, 1  ;;  %v189_v11 = vrot.slane %v178_v8, 1  ;;  %v190_v12 = vrot.slane %v180_v9, 2 }
  0x14   : > { %v438_v30 = vmin.u32 %v290_v29, %v288_v28 }
  0x15   : > { %454 = vmatpush3.bf16.msra.mxu0 %v481_v7  ;;  %v183_v13 = vor.u32 %v182_v10, %v178_v8  ;;  %v191_v14 = vor.u32 %v190_v12, %v189_v11 }
  0x16   : > { %vm292_vm7 = vcmp.le.s32.totalorder %v438_v30, 1 }
  0x17   : > { %184 = vrot.lane.b32.xlu0 %v183_v13, %s492_s24  ;;  %192 = vrot.lane.b32.xlu1 %v191_v14, %s493_s25  ;;  %v293_v34 = vsel %vm292_vm7, 0.33333334, %v490_v0 }
  0x1b   : > { %187 = vrot.lane.b32.xlu0 %v186_v15, %s494_s26  ;;  %195 = vrot.lane.b32.xlu1 %v194_v16, %s495_s27 }
  0x89   : > { %v185_v17 = vpop.permute.xlu0 %184  ;;  %v193_v18 = vpop.permute.xlu1 %192 }
  0x8a   : > { %v200_v19 = vsel %vm197_vm2, %v170_v4, %v185_v17 }
  0x8d   : > { %v188_v20 = vpop.permute.xlu0 %187  ;;  %v196_v21 = vpop.permute.xlu1 %195 }
  0x8e   : > { %v203_v22 = vsel %vm201_vm3, %v200_v19, %v188_v20 }
  0x8f   : > { %v206_v23 = vsel %vm204_vm4, %v203_v22, %v193_v18 }
  0x90   : > { %v209_v24 = vsel %vm207_vm5, %v206_v23, %v196_v21 }
  0x91   : > { %456 = vmatmul.mubr.msk.bf16.vlgmr.msra.gmra.mxu0 %vm237_vm6, %v209_v24 }
 0x151   : > { %v278_v32 = vpop.f32.mrf.mxu0 }
 0x152   : > { %v279_v33 = vadd.f32 %v433_v31, %v278_v32 }
 0x153   : > { %v457_v35 = vpop.f32.mrf.mxu0 }
 0x154   : > { %460 = vmatpush3.msra.mxu1 %v279_v33 }
 0x155   : > { %v281_v36 = vpop.f32.mrf.mxu0  ;;  %462 = vmatmul.mubr.msk.f32.vlgmr.msra.gmra.mxu1 %vm197_vm2, %v293_v34 }
 0x157   : > { %v458_v37 = vpop.f32.mrf.mxu0 }
 0x215   : > { %v363_v38 = vpop.f32.mrf.mxu1 }
 0x216   : > { %vm367_vm8 = vcmp.gt.f32.partialorder %v363_v38, 0.0  ;;  %v368_v39 = vmul.f32 0.2, %v363_v38 }
 0x217   : > { %v463_v40 = vpop.f32.mrf.mxu1 }
 0x218   : > { %v369_v41 = vsel %vm367_vm8, %v363_v38, %v368_v39 }
 0x219   : > { %370 = vst.msk [vmem:[%s168_s5] sm:$0xff] %vm197_vm2, %v369_v41 }
 0x21a PF: > { %s13_s12 = sadd.s32 1, %s488_s12  }
 0x21b   : > { %p10_p4 = scmp.ge.s32.totalorder %s13_s12, 4  }
 0x21d   :  { %12 = sbr.rel (!%p10_p4) target bundleno = 1 (0x1), region = 62 }

// kernel: _lambda_.19
= control target key start
LH: loop header
LB: loop body
LE: loop exit
PB: predicated region body
PF: predicated region fallthrough
CT: control target
= control target key end

     0   :  { %s597_s12 = smov 0   ;;  %s650_s0 = inlined_call_operand.vmem [shape: bf16[2,1,20,16], index: 0, kind: input, shape index: {}]   ;;  %s651_s1 = inlined_call_operand.vmem [shape: bf16[80,16], index: 1, kind: input, shape index: {}]   ;;  %s652_s2 = inlined_call_operand.vmem [shape: f32[1,16], index: 2, kind: input, shape index: {}]   ;;  %s653_s3 = inlined_call_operand.vmem [shape: f32[2,16,16], index: 3, kind: output, shape index: {}]  }
   0x1 LB: > { %s486_s13 = sadd.s32 4294967295, %s569_s12   ;;  %p490_p0 = scmp.ge.s32.totalorder %s569_s12, 1  ;;  %s569_s12 = sphi %s597_s12, %s13_s12  }
   0x2   : > { %p137_p1 = scmp.lt.s32.totalorder %s569_s12, 3 }
   0x4   : > { %p138_p2 = pnand %p490_p0, %p137_p1 }
   0x5   : > { %p161_p3 = scmp.lt.s32.totalorder (!%p138_p2), %s486_s13, 1  ;;  %s573_s28 = smov (!%p138_p2), 16  }
   0x6   : > { %141 = sbr.rel (%p138_p2) target bundleno = 547 (0x223), region = 32  ;;  %s574_s29 = smov (!%p138_p2), 48  }
   0x7   : > { %s575_s30 = smov (!%p138_p2), 32   ;;  %s576_s4 = smov (!%p138_p2), 64  }
   0xb   : > { %v558_v0 = vld [vmem:[%s651_s1 + $0x20] sm:$0xff]   ;;  %s655_s13 = smov (!%p161_p3, %s486_s13), 1  ;;  %v571_v1 = vmov 0.0   ;;  %v559_v2 = vld [vmem:[%s651_s1 + $0x18] sm:$0xff]   ;;  %v560_v3 = vld [vmem:[%s651_s1 + $0x10] sm:$0xff]   ;;  %vm572_vm0 = vmmov 0   ;;  %v325_v37 = vlaneseq }
   0xc   : > { %520 = vmatprep.subr.bf16.mxu0 %v571_v1  ;;  %s541_s18 = smul.u32 12, %s655_s13  ;;  %530 = vmatprep.mubr.msk.bf16.mxu0 %vm572_vm0, %v571_v1  ;;  %v561_v10 = vld [vmem:[%s651_s1 + $0x8] sm:$0xff]   ;;  %vm183_vm1 = vsmask.f32 7424  ;;  %vm204_vm2 = vsmask.f32 6400 }
   0xd   : > { %521 = vmatpush3.bf16.msra.mxu0 %v558_v0  ;;  %vm198_vm3 = vcmask 1046528   ;;  %v562_v24 = vld [vmem:[%s651_s1] sm:$0xff]   ;;  %vm216_vm4 = vcmask 1045504   ;;  %vm222_vm5 = vcmask 130048   ;;  %vm225_vm6 = vcmask 261120   ;;  %s509_s7 = sshll.u32 %s655_s13, 4 }
   0xe   : > { %522 = vmatprep.subr.bf16.mxu0 %v571_v1  ;;  %s165_s21 = scalar_lea.vmem %s650_s0, %s541_s18  ;;  %vm228_vm7 = vcmask 392192   ;;  %vm231_vm8 = vcmask 523264   ;;  %vm281_vm9 = vcmask 654336   ;;  %v326_v38 = vshrl.u32 %v325_v37, 7  ;;  %v496_v50 = vld [vmem:[%s652_s2] ss:$0 sm:$0xff]  ;;  %s170_s10 = scalar_lea.vmem %s653_s3, %s509_s7 }
   0xf   : > { %v556_v4 = vld [vmem:[%s165_s21] sm:$0xff]   ;;  %v557_v5 = vld [vmem:[%s165_s21 + $0x8] ss:$0 sps:$4 sm:$0x33]   ;;  %v329_v39 = vand.u32 127, %v325_v37 }
  0x10   : > { %v185_v6 = vshrl.u32 %v556_v4, 16  ;;  %v187_v7 = vshll.u32 %v556_v4, 16  ;;  %v192_v8 = vshll.u32 %v557_v5, 16  ;;  %v208_v9 = vshrl.u32 %v557_v5, 16 }
  0x11   : > { %523 = vmatpush3.bf16.msra.mxu0 %v559_v2  ;;  %v199_v19 = vrot.slane %v556_v4, 1  ;;  %v200_v20 = vrot.slane %v557_v5, 1  ;;  %v217_v22 = vrot.slane %v556_v4, 2  ;;  %v218_v23 = vrot.slane %v557_v5, 2 }
  0x12   : > { %524 = vmatprep.subr.bf16.mxu0 %v571_v1  ;;  %v189_v11 = vrot.slane %v187_v7, 1  ;;  %v194_v12 = vrot.slane %v192_v8, 1  ;;  %v205_v13 = vrot.slane %v185_v6, 1  ;;  %v206_v14 = vrot.slane %v187_v7, 2 }
  0x13   : > { %v210_v15 = vrot.slane %v208_v9, 1  ;;  %v211_v16 = vrot.slane %v192_v8, 2  ;;  %v201_v27 = vsel %vm198_vm3, %v199_v19, %v200_v20  ;;  %v219_v28 = vsel %vm216_vm4, %v217_v22, %v218_v23 }
  0x14   : > { %v190_v17 = vor.u32 %v189_v11, %v185_v6  ;;  %v207_v18 = vor.u32 %v206_v14, %v205_v13  ;;  %v327_v40 = vadd.s32 8, %v326_v38  ;;  %v330_v41 = vsub.s32 %v326_v38, %v329_v39 }
  0x15   : > { %525 = vmatpush3.bf16.msra.mxu0 %v560_v3  ;;  %v212_v21 = vor.u32 %v211_v16, %v210_v15 }
  0x16   : > { %526 = vmatprep.subr.bf16.mxu0 %v571_v1  ;;  %v195_v25 = vsel %vm183_vm1, %v190_v17, %v194_v12  ;;  %v331_v42 = vsub.s32 %v327_v40, %v329_v39  ;;  %v333_v43 = vsub.s32 0, %v330_v41 }
  0x17   : > { %196 = vrot.lane.b32.xlu0 %v195_v25, %s573_s28  ;;  %v213_v26 = vsel %vm204_vm2, %v207_v18, %v212_v21 }
  0x18   : > { %214 = vrot.lane.b32.xlu1 %v213_v26, %s574_s29  ;;  %v503_v44 = vmin.u32 %v333_v43, %v330_v41  ;;  %v336_v46 = vsub.s32 0, %v331_v42 }
  0x19   : > { %527 = vmatpush3.bf16.msra.mxu0 %v561_v10 }
  0x1a   : > { %528 = vmatprep.subr.bf16.mxu0 %v571_v1  ;;  %vm338_vm10 = vcmp.le.s32.totalorder %v503_v44, 1  ;;  %v504_v48 = vmin.u32 %v336_v46, %v331_v42 }
  0x1b   : > { %202 = vrot.lane.b32.xlu0 %v201_v27, %s575_s30  ;;  %v340_v45 = vsel %vm338_vm10, 0.33333334, %v571_v1 }
  0x1c   : > { %220 = vrot.lane.b32.xlu1 %v219_v28, %s576_s4  ;;  %538 = vmatprep.mubr.msk.f32.mxu1 %vm222_vm5, %v340_v45  ;;  %vm339_vm11 = vcmp.le.s32.totalorder %v504_v48, 1 }
  0x1d   : > { %529 = vmatpush3.bf16.msra.mxu0 %v562_v24  ;;  %v341_v55 = vsel %vm339_vm11, 0.33333334, %v571_v1 }
  0x89   : > { %v197_v29 = vpop.permute.xlu0 %196 }
  0x8a   : > { %v215_v30 = vpop.permute.xlu1 %214  ;;  %v224_v31 = vsel %vm222_vm5, %v556_v4, %v197_v29 }
  0x8d   : > { %v203_v32 = vpop.permute.xlu0 %202 }
  0x8e   : > { %v227_v33 = vsel %vm225_vm6, %v224_v31, %v203_v32  ;;  %v221_v34 = vpop.permute.xlu1 %220 }
  0x8f   : > { %v230_v35 = vsel %vm228_vm7, %v227_v33, %v215_v30 }
  0x90   : > { %v233_v36 = vsel %vm231_vm8, %v230_v35, %v221_v34 }
  0x91   : > { %531 = vmatmul.mubr.msk.bf16.vlgmr.msra.gmra.mxu0 %vm281_vm9, %v233_v36 }
 0x151   : > { %v318_v47 = vpop.f32.mrf.mxu0 }
 0x152   : > { %v319_v54 = vadd.f32 %v496_v50, %v318_v47 }
 0x153   : > { %v532_v49 = vpop.f32.mrf.mxu0 }
 0x155   : > { %v321_v51 = vpop.f32.mrf.mxu0 }
 0x156   : > { %v322_v52 = vadd.f32 %v496_v50, %v321_v51 }
 0x157   : > { %v533_v53 = vpop.f32.mrf.mxu0 }
 0x158   : > { %534 = vmatprep.subr.mxu1 %v322_v52 }
 0x159   : > { %535 = vmatpush3.msra.mxu1 %v322_v52 }
 0x15a   : > { %536 = vmatprep.subr.mxu1 %v319_v54 }
 0x15b   : > { %537 = vmatpush3.msra.mxu1 %v319_v54 }
 0x15c   : > { %539 = vmatmul.mubr.msk.f32.vlgmr.msra.gmra.mxu1 %vm222_vm5, %v341_v55 }
 0x21c   : > { %v540_v56 = vpop.f32.mrf.mxu1 }
 0x21d   : > { %vm424_vm12 = vcmp.gt.f32.partialorder %v540_v56, 0.0  ;;  %v426_v57 = vmul.f32 0.2, %v540_v56 }
 0x21e   : > { %v414_v58 = vpop.f32.mrf.mxu1 }
 0x21f   : > { %v428_v59 = vsel %vm424_vm12, %v540_v56, %v426_v57  ;;  %vm423_vm13 = vcmp.gt.f32.partialorder %v414_v58, 0.0  ;;  %v425_v60 = vmul.f32 0.2, %v414_v58 }
 0x220   : > { %430 = vst.msk [vmem:[%s170_s10 + $0x8] sm:$0xff] %vm222_vm5, %v428_v59 }
 0x221   : > { %v427_v61 = vsel %vm423_vm13, %v414_v58, %v425_v60 }
 0x222   : > { %429 = vst.msk [vmem:[%s170_s10] sm:$0xff] %vm222_vm5, %v427_v61 }
 0x223 PF: > { %s13_s12 = sadd.s32 1, %s569_s12  }
 0x224   : > { %p10_p4 = scmp.ge.s32.totalorder %s13_s12, 4  }
 0x226   :  { %12 = sbr.rel (!%p10_p4) target bundleno = 1 (0x1), region = 62 }

// kernel: _lambda_.21
= control target key start
LH: loop header
LB: loop body
LE: loop exit
PB: predicated region body
PF: predicated region fallthrough
CT: control target
= control target key end

     0   :  { %8 = vsyncpa [#allocation3], 0  ;;  %s712_s0 = inlined_call_operand.vmem [shape: bf16[2,1,20,16], index: 0, kind: input, shape index: {}]   ;;  %s713_s1 = inlined_call_operand.vmem [shape: bf16[80,16], index: 1, kind: input, shape index: {}]   ;;  %s714_s2 = inlined_call_operand.vmem [shape: f32[1,16], index: 2, kind: input, shape index: {}]   ;;  %s715_s3 = inlined_call_operand.hbm [shape: f32[2,16,16], index: 3, kind: output, shape index: {}]  }
   0x1   :  { %10 = vsyncpa [#allocation3 + $0x1], 0  ;;  %s588_s12 = smov 0   ;;  %s590_s13 = smov 0  }
   0x2   :  { %s592_s14 = smov 0   ;;  %s594_s15 = smov 0  }
   0x3 LB: > { %s609_s16 = sadd.s32 4294967295, %s557_s15   ;;  %s401_s17 = sadd.s32 4294967294, %s557_s15   ;;  %s557_s15 = sphi %s594_s15, %s721_s15   ;;  %s553_s14 = sphi %s592_s14, %s720_s14   ;;  %s549_s13 = sphi %s590_s13, %s719_s13   ;;  %s545_s12 = sphi %s588_s12, %s718_s12  }
   0x4   : > { %s613_s18 = sadd.s32 1, %s557_s15   ;;  %s91_s19 = sadd.s32 1, %s553_s14 }
   0x5   : > { %s88_s20 = ssub.s32 %s557_s15, %s613_s18  ;;  %p101_p0 = scmp.ne.s32.totalorder %s553_s14, %s549_s13 }
   0x6   : > { %p89_p1 = scmp.eq.s32.totalorder %s88_s20, 0  ;;  %p102_p2 = scmp.eq.s32.totalorder %s609_s16, 1 }
   0x7   : > { %p107_p3 = scmp.ne.s32.totalorder %s549_s13, %s545_s12  ;;  %p108_p4 = scmp.eq.s32.totalorder %s401_s17, 1 }
   0x8   : > { %s624_s21 = scalar_select %p89_p1, %s553_s14, %s91_s19  }
   0x9   : > { %p626_p5 = por %p102_p2, %p101_p0  ;;  %p630_p6 = por %p108_p4, %p107_p3 }
   0xa   : > { %p404_p7 = scmp.ge.s32.totalorder %s557_s15, 1  ;;  %p140_p8 = scmp.lt.s32.totalorder %s557_s15, 3 }
   0xc   : > { %p141_p9 = pnand %p404_p7, %p140_p8 }
   0xd   : > { %p164_p10 = scmp.lt.s32.totalorder (!%p141_p9), %s609_s16, 1  ;;  %s561_s17 = smov (!%p141_p9), 16  }
   0xe   : > { %144 = sbr.rel (%p141_p9) target bundleno = 367 (0x16f), region = 32  ;;  %s562_s19 = smov (!%p141_p9), 48  }
   0xf   : > { %s563_s20 = smov (!%p141_p9), 32   ;;  %s564_s24 = smov (!%p141_p9), 64  }
  0x10   : > { %s161_s25 = sand.u32 (!%p141_p9), 1, %s549_s13   ;;  %s421_s4 = sshll.u32 (!%p141_p9), %s609_s16, 8 }
  0x11   : > { %s669_s7 = scalar_lea.hbm (!%p141_p9), %s715_s3, %s421_s4  ;;  %s672_s8 = scalar_lea.sflag (!%p141_p9), [#allocation3], %s161_s25 }
  0x12   : > { %s565_s9 = smov (!%p141_p9), [#allocation2]  }
  0x13   : > { %v492_v0 = vld [vmem:[%s713_s1 + $0x20] sm:$0xff]   ;;  %s165_s26 = scalar_select %p164_p10, %s609_s16, 1  ;;  %v559_v1 = vmov 0.0   ;;  %v493_v2 = vld [vmem:[%s713_s1 + $0x18] sm:$0xff]   ;;  %v494_v3 = vld [vmem:[%s713_s1 + $0x10] sm:$0xff]   ;;  %vm560_vm0 = vmmov 0  }
  0x14   : > { %428 = vmatprep.subr.bf16.mxu0 %v559_v1  ;;  %438 = vmatprep.mubr.msk.bf16.mxu0 %vm560_vm0, %v559_v1  ;;  %v495_v10 = vld [vmem:[%s713_s1 + $0x8] sm:$0xff]   ;;  %vm181_vm1 = vsmask.f32 7424  ;;  %vm202_vm2 = vsmask.f32 6400  ;;  %vm196_vm3 = vcmask 1046528  }
  0x15   : > { %429 = vmatpush3.bf16.msra.mxu0 %v492_v0  ;;  %s442_s29 = smul.u32 12, %s165_s26  ;;  %v496_v24 = vld [vmem:[%s713_s1] sm:$0xff]   ;;  %vm214_vm4 = vcmask 1045504   ;;  %vm220_vm5 = vcmask 130048   ;;  %vm223_vm6 = vcmask 261120   ;;  %vm226_vm7 = vcmask 392192  }
  0x16   : > { %430 = vmatprep.subr.bf16.mxu0 %v559_v1  ;;  %vm229_vm8 = vcmask 523264   ;;  %vm279_vm9 = vcmask 654336   ;;  %s405_s26 = sshll.u32 %s161_s25, 4  ;;  %v409_v37 = vld [vmem:[%s714_s2] ss:$0 sm:$0xff]  ;;  %s501_s10 = sshll.u32 %s565_s9, 4  ;;  %s502_s10 = int_to_ptr.vmem [resolvable:$false] %s501_s10 }
  0x17   : > { %s168_s5 = scalar_lea.vmem %s712_s0, %s442_s29  ;;  %s163_s29 = scalar_lea.vmem [#allocation2], %s405_s26 }
  0x18   : > { %v490_v4 = vld [vmem:[%s168_s5] sm:$0xff]   ;;  %v491_v5 = vld [vmem:[%s168_s5 + $0x8] ss:$0 sps:$4 sm:$0x33]   ;;  %s339_s30 = sshll.u32 %s163_s29, 4  ;;  %s503_s11 = scalar_lea.vmem %s502_s10, 512  ;;  %s664_s30 = int_to_ptr.vmem [resolvable:$true] %s339_s30 }
  0x19   : > { %431 = vmatpush3.bf16.msra.mxu0 %v493_v2  ;;  %v183_v6 = vshrl.u32 %v490_v4, 16  ;;  %v185_v7 = vshll.u32 %v490_v4, 16  ;;  %v190_v8 = vshll.u32 %v491_v5, 16  ;;  %v206_v9 = vshrl.u32 %v491_v5, 16  ;;  %s497_s16 = scalar_lea.vmem %s664_s30, 256  ;;  %p504_p0 = scmp.lt.s32.totalorder %s664_s30, %s502_s10 }
  0x1a   : > { %432 = vmatprep.subr.bf16.mxu0 %v559_v1  ;;  %v197_v19 = vrot.slane %v490_v4, 1  ;;  %v198_v20 = vrot.slane %v491_v5, 1  ;;  %v215_v22 = vrot.slane %v490_v4, 2  ;;  %v216_v23 = vrot.slane %v491_v5, 2  ;;  %p498_p11 = scmp.ne.s32.totalorder %s664_s30, %s497_s16  ;;  %p505_p1 = scmp.lt.s32.totalorder %s503_s11, %s497_s16 }
  0x1b   : > { %v187_v11 = vrot.slane %v185_v7, 1  ;;  %v192_v12 = vrot.slane %v190_v8, 1  ;;  %v203_v13 = vrot.slane %v183_v6, 1  ;;  %v204_v14 = vrot.slane %v185_v7, 2 }
  0x1c   : > { %v208_v15 = vrot.slane %v206_v9, 1  ;;  %v209_v16 = vrot.slane %v190_v8, 2  ;;  %v199_v27 = vsel %vm196_vm3, %v197_v19, %v198_v20  ;;  %v217_v28 = vsel %vm214_vm4, %v215_v22, %v216_v23  ;;  %p499_p12 = pnand %p498_p11, %p626_p5  ;;  %p506_p2 = por %p505_p1, %p504_p0 }
  0x1d   : > { %433 = vmatpush3.bf16.msra.mxu0 %v494_v3  ;;  %v188_v17 = vor.u32 %v187_v11, %v183_v6  ;;  %v205_v18 = vor.u32 %v204_v14, %v203_v13 }
  0x1e   : > { %434 = vmatprep.subr.bf16.mxu0 %v559_v1  ;;  %v210_v21 = vor.u32 %v209_v16, %v208_v15  ;;  %p500_p13 = pneg %p499_p12 }
  0x1f   : > { %v193_v25 = vsel %vm181_vm1, %v188_v17, %v192_v12 }
  0x20   : > { %194 = vrot.lane.b32.xlu0 %v193_v25, %s561_s17  ;;  %v211_v26 = vsel %vm202_vm2, %v205_v18, %v210_v21  ;;  %p507_p3 = pnand %p506_p2, %p500_p13 }
  0x21   : > { %435 = vmatpush3.bf16.msra.mxu0 %v495_v10  ;;  %212 = vrot.lane.b32.xlu1 %v211_v26, %s562_s19 }
  0x22   : > { %436 = vmatprep.subr.bf16.mxu0 %v559_v1 }
  0x24   : > { %200 = vrot.lane.b32.xlu0 %v199_v27, %s563_s20 }
  0x25   : > { %437 = vmatpush3.bf16.msra.mxu0 %v496_v24  ;;  %218 = vrot.lane.b32.xlu1 %v217_v28, %s564_s24 }
  0x92   : > { %v195_v29 = vpop.permute.xlu0 %194 }
  0x93   : > { %v213_v30 = vpop.permute.xlu1 %212  ;;  %v222_v31 = vsel %vm220_vm5, %v490_v4, %v195_v29 }
  0x96   : > { %v201_v32 = vpop.permute.xlu0 %200 }
  0x97   : > { %v225_v33 = vsel %vm223_vm6, %v222_v31, %v201_v32  ;;  %v219_v34 = vpop.permute.xlu1 %218 }
  0x98   : > { %v228_v35 = vsel %vm226_vm7, %v225_v33, %v213_v30 }
  0x99   : > { %v231_v36 = vsel %vm229_vm8, %v228_v35, %v219_v34 }
  0x9a   : > { %439 = vmatmul.mubr.msk.bf16.vlgmr.msra.gmra.mxu0 %vm279_vm9, %v231_v36 }
 0x15a   : > { %v316_v38 = vpop.f32.mrf.mxu0 }
 0x15b   : > { %v317_v39 = vadd.f32 %v409_v37, %v316_v38 }
 0x15c   : > { %v440_v40 = vpop.f32.mrf.mxu0 }
 0x15d   : > { %323 = vst.msk [vmem:[%s163_s29] sm:$0xff] %vm220_vm5, %v317_v39 }
 0x15e   : > { %v319_v41 = vpop.f32.mrf.mxu0 }
 0x15f   : > { %v320_v42 = vadd.f32 %v409_v37, %v319_v41 }
 0x160   : > { %v441_v43 = vpop.f32.mrf.mxu0 }
 0x161   : > { %324 = vst.msk [vmem:[%s163_s29 + $0x8] sm:$0xff] %vm220_vm5, %v320_v42 }
 0x162   : > { %510 = shalt.err (!%p507_p3)
}
 0x163   : > { %s511_s17 = scalar_lea.hbm %s669_s7, 256  ;;  %s515_s24 = scalar_lea.hbm %s715_s3, 512 }
 0x164   : > { %p512_p4 = scmp.ne.s32.totalorder %s669_s7, %s511_s17  ;;  %p516_p9 = scmp.lt.s32.totalorder %s669_s7, %s715_s3 }
 0x165   : > { %p517_p10 = scmp.lt.s32.totalorder %s515_s24, %s511_s17 }
 0x166   : > { %p513_p7 = pnand %p512_p4, %p626_p5 }
 0x167   : > { %p518_p11 = por %p517_p10, %p516_p9 }
 0x168   : > { %p514_p8 = pneg %p513_p7 }
 0x16a   : > { %p519_p12 = pnand %p518_p11, %p514_p8 }
 0x16c   : > { %522 = shalt.err (!%p519_p12)
}
 0x16d   : > { %s566_s27 = smov 128   ;;  %s567_s28 = smov 8  }
 0x16e   : > { %443 = dma.vmem_to_hbm [thread:$0]  (%p626_p5), %s664_s30, 256, %s669_s7, %s672_s8, %s566_s27, %s566_s27, %s567_s28  }
 0x16f PF: > { %p449_p13 = scmp.ge.s32.totalorder %s557_s15, 2  ;;  %s354_s29 = sand.u32 1, %s545_s12  }
 0x170   : > { %s355_s4 = scalar_lea.sflag [#allocation3], %s354_s29 }
 0x171   : > { %p446_p0 = pnand %p449_p13, %p630_p6 }
 0x173   : > { %p447_p1 = pneg %p446_p0 }
 0x175   : > { %540 = dma.done.wait (%p447_p1), %s355_s4, 256  }
 0x176   : > { %542 = vsyncadd (%p447_p1), %s355_s4, 4294967040  ;;  %p13_p2 = scmp.ge.s32.totalorder %s613_s18, 4   ;;  %s718_s12 = smov %s549_s13 }
 0x177   : > { %s719_s13 = smov %s553_s14  ;;  %s720_s14 = smov %s624_s21 }
 0x178   : > { %s721_s15 = smov %s613_s18  ;;  %15 = sbr.rel (!%p13_p2) target bundleno = 3 (0x3), region = 67 }
 0x17d   :  { %360 = vsyncpa [#allocation3], 1 }
 0x17e   :  { %362 = vsyncpa [#allocation3 + $0x1], 1 }

</bundles_post_ra>
